<compile_context>
chip_gen: v7x
topology: tpu7x:2x2x1
jax: 0.10.0
libtpu: 0.0.40
codegen_flags: <defaults>
</compile_context>

<pallas_src>
import math
from functools import partial

import jax
import jax.numpy as jnp
from jax.experimental import pallas as pl
from jax.experimental.pallas import tpu as pltpu


# ----------------------------- in-kernel helpers -----------------------------

def _layer_norm(x, gamma, beta, eps=1e-12):
    # PyTorch nn.LayerNorm: biased variance over last dim, eps inside sqrt.
    mu = jnp.mean(x, axis=-1, keepdims=True)
    xc = x - mu
    var = jnp.mean(xc * xc, axis=-1, keepdims=True)
    return xc * jax.lax.rsqrt(var + eps) * gamma + beta


def _gelu_exact(x):
    # nn.GELU() default = exact erf-based GELU.
    return 0.5 * x * (1.0 + jax.lax.erf(x * 0.7071067811865476))


# --------------------------------- kernel ------------------------------------

def bert_encoder_kernel(x_ref, mask_ref,
                        wqkv_ref, wo_ref, w1_ref, w2_ref, vec_ref,
                        out_ref, *maybe_probs_ref,
                        num_heads):
    l = pl.program_id(1)
    TB, S, H = out_ref.shape
    I = w1_ref.shape[-1]
    nh = num_heads
    d = H // nh
    wdt = wqkv_ref.dtype                       # matmul operand dtype (bf16)

    # First layer of this batch block: seed the VMEM-resident activation.
    # The hidden output block's index ignores the layer axis, so it stays in
    # VMEM across all layers and is written back to HBM only at the end.
    @pl.when(l == 0)
    def _():
        out_ref[...] = x_ref[...]

    x = out_ref[...]                           # (TB, S, H) fp32 layer input / residual
    x2d = x.reshape(TB * S, H)
    mask = mask_ref[...]                       # (TB, 1, S) additive key mask

    # ---- packed per-layer small vectors (fp32) ----
    vec = vec_ref[0]                           # (8, maxW)
    bqkv  = vec[0:1, :3 * H]
    bo    = vec[1:2, :H]
    ln1_g = vec[2:3, :H]
    ln1_b = vec[3:4, :H]
    b1    = vec[4:5, :I]
    b2    = vec[5:6, :H]
    ln2_g = vec[6:7, :H]
    ln2_b = vec[7:8, :H]

    # ---- fused QKV projection: (TB*S, H) @ (H, 3H), bf16 in / fp32 acc ----
    qkv = jnp.dot(x2d.astype(wdt), wqkv_ref[0],
                  preferred_element_type=jnp.float32) + bqkv
    scale = 1.0 / math.sqrt(d)

    def split_heads(cols):
        # (TB*S, H) columns -> (TB*nh, S, d) head-major, via lane-column slices
        # + concat along a major axis (no XLU transpose, no per-head matmuls).
        chunks = [cols[:, h * d:(h + 1) * d].reshape(TB, 1, S, d)
                  for h in range(nh)]
        return jnp.concatenate(chunks, axis=1).reshape(TB * nh, S, d)

    # 1/sqrt(d) folded into q (TB*S*H multiplies instead of TB*nh*S*S).
    qh = split_heads(qkv[:, :H] * scale).astype(wdt)
    kh = split_heads(qkv[:, H:2 * H]).astype(wdt)
    vh = split_heads(qkv[:, 2 * H:]).astype(wdt)

    # ---- all heads at once: single leading batch dim n = b*nh + h ----
    scores = jnp.einsum('nqd,nkd->nqk', qh, kh,
                        preferred_element_type=jnp.float32)       # (TB*nh, S, S)
    scores = scores.reshape(TB, nh, S, S) + mask[:, :, None, :]   # bcast heads/queries
    m = jnp.max(scores, axis=-1, keepdims=True)
    e = jnp.exp(scores - m)
    p = e / jnp.sum(e, axis=-1, keepdims=True)   # exact divide: rows sum to 1
    if maybe_probs_ref:                          # only when output_attentions
        maybe_probs_ref[0][...] = p              # single (TB,nh,S,S) store / layer
    # TODO(synk): attention dropout(probs) is identity (eval mode); no RNG mask.

    ctx = jnp.einsum('nqk,nkd->nqd', p.reshape(TB * nh, S, S).astype(wdt), vh,
                     preferred_element_type=jnp.float32)          # (TB*nh, S, d)
    ctx4 = ctx.reshape(TB, nh, S, d)
    # back to token-major (TB*S, H): per-head lane-column concat (no transpose)
    ctx2d = jnp.concatenate(
        [ctx4[:, h].reshape(TB * S, d) for h in range(nh)], axis=1)

    # ---- attention output projection + residual + LayerNorm (fp32) ----
    attn = jnp.dot(ctx2d.astype(wdt), wo_ref[0],
                   preferred_element_type=jnp.float32) + bo
    attn = _layer_norm(attn + x2d, ln1_g, ln1_b)

    # ---- GELU FFN + output projection + residual + LayerNorm (fp32) ----
    inter = _gelu_exact(jnp.dot(attn.astype(wdt), w1_ref[0],
                                preferred_element_type=jnp.float32) + b1)
    ffn = jnp.dot(inter.astype(wdt), w2_ref[0],
                  preferred_element_type=jnp.float32) + b2
    out = _layer_norm(ffn + attn, ln2_g, ln2_b)

    out_ref[...] = out.reshape(TB, S, H)   # carried to next layer, VMEM resident


# --------------------------------- wrapper ------------------------------------

def bert_encoder(x, attention_mask, params, num_heads, *,
                 output_attentions=False, batch_block=None):
    B, S, H = x.shape
    L = params["wqkv"].shape[0]
    I = params["w1"].shape[2]
    maxw = params["vecs"].shape[2]

    if batch_block is None:
        # Fold the whole batch into the matmul M dimension so per-layer
        # weights are streamed from HBM once per pass.  On v7x (2 TensorCores)
        # prefer batch_block = B // 2 so both cores get a batch block.
        batch_block = B
    assert B % batch_block == 0, "batch must be divisible by batch_block"
    TB = batch_block
    nb = B // TB

    def layer_w(shape):
        # One layer's slice of an (L, ...) stacked parameter per grid step.
        return pl.BlockSpec((1,) + shape, lambda b, l: (l,) + (0,) * len(shape))

    in_specs = [
        pl.BlockSpec((TB, S, H), lambda b, l: (b, 0, 0)),     # hidden_states
        pl.BlockSpec((TB, 1, S), lambda b, l: (b, 0, 0)),     # additive mask
        layer_w((H, 3 * H)),                                  # fused Wqkv (bf16)
        layer_w((H, H)),                                      # Wo (bf16)
        layer_w((H, I)),                                      # FFN W1 (bf16)
        layer_w((I, H)),                                      # FFN W2 (bf16)
        layer_w((8, maxw)),                                   # packed biases/LN (fp32)
    ]

    if output_attentions:
        out_specs = (
            pl.BlockSpec((TB, S, H), lambda b, l: (b, 0, 0)),
            pl.BlockSpec((TB, num_heads, S, S), lambda b, l: (b, l, 0, 0)),
        )
        out_shape = (
            jax.ShapeDtypeStruct((B, S, H), jnp.float32),
            jax.ShapeDtypeStruct((B, L * num_heads, S, S), jnp.float32),
        )
    else:
        out_specs = pl.BlockSpec((TB, S, H), lambda b, l: (b, 0, 0))
        out_shape = jax.ShapeDtypeStruct((B, S, H), jnp.float32)

    # Explicit VMEM budget: double-buffered blocks + fp32 intermediates.
    f32b = 4
    wb = jnp.dtype(params["wqkv"].dtype).itemsize
    per_step_blocks = (
        2 * TB * S * H * f32b + TB * S * f32b
        + (H * 3 * H + H * H + H * I + I * H) * wb
        + 8 * maxw * f32b)
    if output_attentions:
        per_step_blocks += TB * num_heads * S * S * f32b
    intermediates = (
        TB * S * 3 * H * f32b
        + 3 * TB * num_heads * S * S * f32b
        + TB * S * I * f32b
        + 6 * TB * S * H * f32b)
    vmem_limit = int(min(max(2 * per_step_blocks + intermediates + (4 << 20),
                             32 << 20), 100 << 20))

    result = pl.pallas_call(
        partial(bert_encoder_kernel, num_heads=num_heads),
        out_shape=out_shape,
        grid_spec=pltpu.PrefetchScalarGridSpec(
            num_scalar_prefetch=0,
            grid=(nb, L),
            in_specs=in_specs,
            out_specs=out_specs,
        ),
        compiler_params=pltpu.CompilerParams(
            dimension_semantics=("parallel", "arbitrary"),
            vmem_limit_bytes=vmem_limit),
    )(x, attention_mask,
      params["wqkv"], params["wo"], params["w1"], params["w2"], params["vecs"])

    if output_attentions:
        hidden, probs = result
        probs = probs.reshape(B, L, num_heads, S, S)   # free: splits a leading dim
        all_attentions = tuple(probs[:, i] for i in range(L))
        return hidden, all_attentions
    return result, None


# ------------------------------ parameter init --------------------------------

def init_bert_params(key, num_layers, hidden_size, intermediate_size,
                     matmul_dtype=jnp.bfloat16):
    H, I = hidden_size, intermediate_size
    maxw = max(3 * H, I, H)

    def w(k, shape):
        # (in, out) layout, applied as x @ W (== PyTorch's x @ weight.T).
        return (jax.random.normal(k, shape, jnp.float32) * 0.02).astype(matmul_dtype)

    def b(k, n):
        return jax.random.normal(k, (n,), jnp.float32) * 0.02

    wqkv, wo, w1, w2, vecs = [], [], [], [], []
    for layer in range(num_layers):
        lkey = jax.random.fold_in(key, layer)
        ks = jax.random.split(lkey, 10)
        wq, wk, wv = w(ks[0], (H, H)), w(ks[1], (H, H)), w(ks[2], (H, H))
        wqkv.append(jnp.concatenate([wq, wk, wv], axis=1))   # (H, 3H), fused out axis
        wo.append(w(ks[3], (H, H)))
        w1.append(w(ks[4], (H, I)))
        w2.append(w(ks[5], (I, H)))
        # Packed small vectors (fp32), rows:
        #   0 bqkv | 1 bo | 2 ln1_g | 3 ln1_b | 4 b1 | 5 b2 | 6 ln2_g | 7 ln2_b
        v = jnp.zeros((8, maxw), jnp.float32)
        v = v.at[0, :3 * H].set(b(ks[6], 3 * H))
        v = v.at[1, :H].set(b(ks[7], H))
        v = v.at[2, :H].set(1.0)
        v = v.at[4, :I].set(b(ks[8], I))
        v = v.at[5, :H].set(b(ks[9], H))
        v = v.at[6, :H].set(1.0)
        vecs.append(v)

    return dict(
        wqkv=jnp.stack(wqkv), wo=jnp.stack(wo),
        w1=jnp.stack(w1), w2=jnp.stack(w2),
        vecs=jnp.stack(vecs))


# ----------------------------------- main --------------------------------------

if __name__ == "__main__":
    B, S, H = 2, 8, 32
    NUM_HEADS = 4
    INTERMEDIATE = 64
    NUM_LAYERS = 2

    key = jax.random.PRNGKey(0)
    kx, kp = jax.random.split(key)

    x = jax.random.normal(kx, (B, S, H), jnp.float32)
    # Additive attention mask (all zeros == no masking).
    attention_mask = jnp.zeros((B, 1, S), jnp.float32)

    params = init_bert_params(kp, NUM_LAYERS, H, INTERMEDIATE)

    hidden, all_attentions = bert_encoder(
        x, attention_mask, params, NUM_HEADS, output_attentions=True)
    jax.block_until_ready(hidden)
    for a in all_attentions:
        jax.block_until_ready(a)

    assert hidden.shape == (B, S, H)
    assert len(all_attentions) == NUM_LAYERS
    assert all_attentions[0].shape == (B, NUM_HEADS, S, S)
    # Exact-divide softmax: attention rows sum to 1.
    assert bool(jnp.allclose(jnp.sum(all_attentions[0], axis=-1), 1.0, atol=1e-3))

    # No-attentions variant (separate, cheaper compile: no probs output at all).
    hidden2, none_att = bert_encoder(
        x, attention_mask, params, NUM_HEADS, output_attentions=False)
    jax.block_until_ready(hidden2)
    assert none_att is None
    assert bool(jnp.allclose(hidden, hidden2, atol=1e-5, rtol=1e-5))

    # TODO(synk): dropout layers are identity (eval mode); training-mode RNG
    # masking is not implemented.
    print("KERNEL_OK")
</pallas_src>

<mosaic_0001>
module attributes {stable_mosaic.version = 11 : i64} {
  func.func @bert_encoder_kernel(%arg0: i32, %arg1: i32, %arg2: memref<2x8x32xf32, #tpu.memory_space<vmem>>, %arg3: memref<2x1x8xf32, #tpu.memory_space<vmem>>, %arg4: memref<1x32x96xbf16, #tpu.memory_space<vmem>>, %arg5: memref<1x32x32xbf16, #tpu.memory_space<vmem>>, %arg6: memref<1x32x64xbf16, #tpu.memory_space<vmem>>, %arg7: memref<1x64x32xbf16, #tpu.memory_space<vmem>>, %arg8: memref<1x8x96xf32, #tpu.memory_space<vmem>>, %arg9: memref<2x8x32xf32, #tpu.memory_space<vmem>>, %arg10: memref<2x4x8x8xf32, #tpu.memory_space<vmem>>) attributes {dimension_semantics = [#tpu.dimension_semantics<parallel>, #tpu.dimension_semantics<arbitrary>], iteration_bounds = array<i64: 1, 2>, scalar_prefetch = 0 : i64, scratch_operands = 0 : i64, tpu.core_type = #tpu.core_type<tc>, window_params = [{transform_indices = @transform_0, window_bounds = array<i64: 2, 8, 32>}, {transform_indices = @transform_1, window_bounds = array<i64: 2, 1, 8>}, {transform_indices = @transform_2, window_bounds = array<i64: 1, 32, 96>}, {transform_indices = @transform_3, window_bounds = array<i64: 1, 32, 32>}, {transform_indices = @transform_4, window_bounds = array<i64: 1, 32, 64>}, {transform_indices = @transform_5, window_bounds = array<i64: 1, 64, 32>}, {transform_indices = @transform_6, window_bounds = array<i64: 1, 8, 96>}, {transform_indices = @transform_7, window_bounds = array<i64: 2, 8, 32>}, {transform_indices = @transform_8, window_bounds = array<i64: 2, 4, 8, 8>}]} {
    %c0_i32 = arith.constant 0 : i32
    %0 = arith.cmpi eq, %arg1, %c0_i32 : i32
    %1 = arith.extui %0 : i1 to i32
    %c0_i32_0 = arith.constant 0 : i32
    %2 = arith.cmpi ne, %1, %c0_i32_0 : i32
    scf.if %2 {
      %c0_49 = arith.constant 0 : index
      %c0_50 = arith.constant 0 : index
      %c0_51 = arith.constant 0 : index
      %162 = vector.load %arg2[%c0_49, %c0_50, %c0_51] : memref<2x8x32xf32, #tpu.memory_space<vmem>>, vector<2x8x32xf32>
      %c0_52 = arith.constant 0 : index
      %c0_53 = arith.constant 0 : index
      %c0_54 = arith.constant 0 : index
      %163 = vector.load %arg9[%c0_52, %c0_53, %c0_54] : memref<2x8x32xf32, #tpu.memory_space<vmem>>, vector<2x8x32xf32>
      tpu.vector_store %arg9[%c0_52, %c0_53, %c0_54], %162 {strides = array<i32>} : memref<2x8x32xf32, #tpu.memory_space<vmem>>, vector<2x8x32xf32>,
    } else {
    }
    %c0 = arith.constant 0 : index
    %c0_1 = arith.constant 0 : index
    %c0_2 = arith.constant 0 : index
    %3 = vector.load %arg9[%c0, %c0_1, %c0_2] : memref<2x8x32xf32, #tpu.memory_space<vmem>>, vector<2x8x32xf32>
    %4 = vector.shape_cast %3 : vector<2x8x32xf32> to vector<16x32xf32>
    %c0_3 = arith.constant 0 : index
    %c0_4 = arith.constant 0 : index
    %c0_5 = arith.constant 0 : index
    %5 = vector.load %arg3[%c0_3, %c0_4, %c0_5] : memref<2x1x8xf32, #tpu.memory_space<vmem>>, vector<2x1x8xf32>
    %c0_6 = arith.constant 0 : index
    %c0_7 = arith.constant 0 : index
    %c0_8 = arith.constant 0 : index
    %6 = vector.load %arg8[%c0_6, %c0_7, %c0_8] : memref<1x8x96xf32, #tpu.memory_space<vmem>>, vector<1x8x96xf32>
    %7 = vector.shape_cast %6 : vector<1x8x96xf32> to vector<8x96xf32>
    %8 = vector.extract_strided_slice %7 {offsets = [0, 0], sizes = [1, 96], strides = [1, 1]} : vector<8x96xf32> to vector<1x96xf32>
    %9 = vector.extract_strided_slice %7 {offsets = [1, 0], sizes = [1, 32], strides = [1, 1]} : vector<8x96xf32> to vector<1x32xf32>
    %10 = vector.extract_strided_slice %7 {offsets = [2, 0], sizes = [1, 32], strides = [1, 1]} : vector<8x96xf32> to vector<1x32xf32>
    %11 = vector.extract_strided_slice %7 {offsets = [3, 0], sizes = [1, 32], strides = [1, 1]} : vector<8x96xf32> to vector<1x32xf32>
    %12 = vector.extract_strided_slice %7 {offsets = [4, 0], sizes = [1, 64], strides = [1, 1]} : vector<8x96xf32> to vector<1x64xf32>
    %13 = vector.extract_strided_slice %7 {offsets = [5, 0], sizes = [1, 32], strides = [1, 1]} : vector<8x96xf32> to vector<1x32xf32>
    %14 = vector.extract_strided_slice %7 {offsets = [6, 0], sizes = [1, 32], strides = [1, 1]} : vector<8x96xf32> to vector<1x32xf32>
    %15 = vector.extract_strided_slice %7 {offsets = [7, 0], sizes = [1, 32], strides = [1, 1]} : vector<8x96xf32> to vector<1x32xf32>
    %16 = arith.truncf %4 : vector<16x32xf32> to vector<16x32xbf16>
    %c0_9 = arith.constant 0 : index
    %c0_10 = arith.constant 0 : index
    %c0_11 = arith.constant 0 : index
    %17 = vector.load %arg4[%c0_9, %c0_10, %c0_11] : memref<1x32x96xbf16, #tpu.memory_space<vmem>>, vector<1x32x96xbf16>
    %18 = vector.shape_cast %17 : vector<1x32x96xbf16> to vector<32x96xbf16>
    %cst = arith.constant dense<0.000000e+00> : vector<16x96xf32>
    %19 = tpu.matmul %16, %18, %cst {dimension_numbers = #tpu.dot_dimension_numbers<[1], [0], [0], [1], [0, 0, 1, 1], [], []>} : vector<16x32xbf16>, vector<32x96xbf16>, vector<16x96xf32> -> vector<16x96xf32>
    %20 = vector.broadcast %8 : vector<1x96xf32> to vector<16x96xf32>
    %21 = arith.addf %19, %20 : vector<16x96xf32>
    %22 = vector.extract_strided_slice %21 {offsets = [0, 0], sizes = [16, 32], strides = [1, 1]} : vector<16x96xf32> to vector<16x32xf32>
    %cst_12 = arith.constant 0.353553385 : f32
    %23 = vector.broadcast %cst_12 : f32 to vector<16x32xf32>
    %24 = arith.mulf %22, %23 : vector<16x32xf32>
    %25 = vector.extract_strided_slice %24 {offsets = [0, 0], sizes = [16, 8], strides = [1, 1]} : vector<16x32xf32> to vector<16x8xf32>
    %26 = vector.shape_cast %25 : vector<16x8xf32> to vector<2x1x8x8xf32>
    %27 = vector.extract_strided_slice %24 {offsets = [0, 8], sizes = [16, 8], strides = [1, 1]} : vector<16x32xf32> to vector<16x8xf32>
    %28 = vector.shape_cast %27 : vector<16x8xf32> to vector<2x1x8x8xf32>
    %29 = vector.extract_strided_slice %24 {offsets = [0, 16], sizes = [16, 8], strides = [1, 1]} : vector<16x32xf32> to vector<16x8xf32>
    %30 = vector.shape_cast %29 : vector<16x8xf32> to vector<2x1x8x8xf32>
    %31 = vector.extract_strided_slice %24 {offsets = [0, 24], sizes = [16, 8], strides = [1, 1]} : vector<16x32xf32> to vector<16x8xf32>
    %32 = vector.shape_cast %31 : vector<16x8xf32> to vector<2x1x8x8xf32>
    %33 = tpu.concatenate %26, %28, %30, %32 in 1 : vector<2x1x8x8xf32>, vector<2x1x8x8xf32>, vector<2x1x8x8xf32>, vector<2x1x8x8xf32> -> vector<2x4x8x8xf32>
    %34 = vector.shape_cast %33 : vector<2x4x8x8xf32> to vector<8x8x8xf32>
    %35 = arith.truncf %34 : vector<8x8x8xf32> to vector<8x8x8xbf16>
    %36 = vector.extract_strided_slice %21 {offsets = [0, 32], sizes = [16, 32], strides = [1, 1]} : vector<16x96xf32> to vector<16x32xf32>
    %37 = vector.extract_strided_slice %36 {offsets = [0, 0], sizes = [16, 8], strides = [1, 1]} : vector<16x32xf32> to vector<16x8xf32>
    %38 = vector.shape_cast %37 : vector<16x8xf32> to vector<2x1x8x8xf32>
    %39 = vector.extract_strided_slice %36 {offsets = [0, 8], sizes = [16, 8], strides = [1, 1]} : vector<16x32xf32> to vector<16x8xf32>
    %40 = vector.shape_cast %39 : vector<16x8xf32> to vector<2x1x8x8xf32>
    %41 = vector.extract_strided_slice %36 {offsets = [0, 16], sizes = [16, 8], strides = [1, 1]} : vector<16x32xf32> to vector<16x8xf32>
    %42 = vector.shape_cast %41 : vector<16x8xf32> to vector<2x1x8x8xf32>
    %43 = vector.extract_strided_slice %36 {offsets = [0, 24], sizes = [16, 8], strides = [1, 1]} : vector<16x32xf32> to vector<16x8xf32>
    %44 = vector.shape_cast %43 : vector<16x8xf32> to vector<2x1x8x8xf32>
    %45 = tpu.concatenate %38, %40, %42, %44 in 1 : vector<2x1x8x8xf32>, vector<2x1x8x8xf32>, vector<2x1x8x8xf32>, vector<2x1x8x8xf32> -> vector<2x4x8x8xf32>
    %46 = vector.shape_cast %45 : vector<2x4x8x8xf32> to vector<8x8x8xf32>
    %47 = arith.truncf %46 : vector<8x8x8xf32> to vector<8x8x8xbf16>
    %48 = vector.extract_strided_slice %21 {offsets = [0, 64], sizes = [16, 32], strides = [1, 1]} : vector<16x96xf32> to vector<16x32xf32>
    %49 = vector.extract_strided_slice %48 {offsets = [0, 0], sizes = [16, 8], strides = [1, 1]} : vector<16x32xf32> to vector<16x8xf32>
    %50 = vector.shape_cast %49 : vector<16x8xf32> to vector<2x1x8x8xf32>
    %51 = vector.extract_strided_slice %48 {offsets = [0, 8], sizes = [16, 8], strides = [1, 1]} : vector<16x32xf32> to vector<16x8xf32>
    %52 = vector.shape_cast %51 : vector<16x8xf32> to vector<2x1x8x8xf32>
    %53 = vector.extract_strided_slice %48 {offsets = [0, 16], sizes = [16, 8], strides = [1, 1]} : vector<16x32xf32> to vector<16x8xf32>
    %54 = vector.shape_cast %53 : vector<16x8xf32> to vector<2x1x8x8xf32>
    %55 = vector.extract_strided_slice %48 {offsets = [0, 24], sizes = [16, 8], strides = [1, 1]} : vector<16x32xf32> to vector<16x8xf32>
    %56 = vector.shape_cast %55 : vector<16x8xf32> to vector<2x1x8x8xf32>
    %57 = tpu.concatenate %50, %52, %54, %56 in 1 : vector<2x1x8x8xf32>, vector<2x1x8x8xf32>, vector<2x1x8x8xf32>, vector<2x1x8x8xf32> -> vector<2x4x8x8xf32>
    %58 = vector.shape_cast %57 : vector<2x4x8x8xf32> to vector<8x8x8xf32>
    %59 = arith.truncf %58 : vector<8x8x8xf32> to vector<8x8x8xbf16>
    "tpu.trace_start"() <{level = 10 : i32, message = "nqd,nkd->nqk"}> : () -> ()
    %cst_13 = arith.constant dense<0.000000e+00> : vector<8x8x8xf32>
    %60 = tpu.matmul %35, %47, %cst_13 {dimension_numbers = #tpu.dot_dimension_numbers<[2], [2], [1], [1], [0, 0, 0, 1, 1, 1], [0], [0]>} : vector<8x8x8xbf16>, vector<8x8x8xbf16>, vector<8x8x8xf32> -> vector<8x8x8xf32>
    "tpu.trace_stop"() : () -> ()
    %61 = vector.shape_cast %60 : vector<8x8x8xf32> to vector<2x4x8x8xf32>
    %62 = vector.shape_cast %5 : vector<2x1x8xf32> to vector<2x1x1x8xf32>
    %63 = vector.broadcast %62 : vector<2x1x1x8xf32> to vector<2x4x8x8xf32>
    %64 = arith.addf %61, %63 : vector<2x4x8x8xf32>
    %cst_14 = arith.constant dense<0xFF800000> : vector<2x4x8xf32>
    %65 = vector.multi_reduction <maximumf>, %64, %cst_14 [3] : vector<2x4x8x8xf32> to vector<2x4x8xf32>
    %66 = vector.shape_cast %65 : vector<2x4x8xf32> to vector<2x4x8x1xf32>
    %67 = vector.broadcast %66 : vector<2x4x8x1xf32> to vector<2x4x8x8xf32>
    %68 = arith.subf %64, %67 : vector<2x4x8x8xf32>
    %69 = math.exp %68 : vector<2x4x8x8xf32>
    %cst_15 = arith.constant dense<0.000000e+00> : vector<2x4x8xf32>
    %70 = vector.multi_reduction <add>, %69, %cst_15 [3] : vector<2x4x8x8xf32> to vector<2x4x8xf32>
    %71 = vector.shape_cast %70 : vector<2x4x8xf32> to vector<2x4x8x1xf32>
    %72 = vector.broadcast %71 : vector<2x4x8x1xf32> to vector<2x4x8x8xf32>
    %73 = arith.divf %69, %72 : vector<2x4x8x8xf32>
    %c0_16 = arith.constant 0 : index
    %c0_17 = arith.constant 0 : index
    %c0_18 = arith.constant 0 : index
    %c0_19 = arith.constant 0 : index
    %74 = vector.load %arg10[%c0_16, %c0_17, %c0_18, %c0_19] : memref<2x4x8x8xf32, #tpu.memory_space<vmem>>, vector<2x4x8x8xf32>
    tpu.vector_store %arg10[%c0_16, %c0_17, %c0_18, %c0_19], %73 {strides = array<i32>} : memref<2x4x8x8xf32, #tpu.memory_space<vmem>>, vector<2x4x8x8xf32>,
    %75 = vector.shape_cast %73 : vector<2x4x8x8xf32> to vector<8x8x8xf32>
    %76 = arith.truncf %75 : vector<8x8x8xf32> to vector<8x8x8xbf16>
    "tpu.trace_start"() <{level = 10 : i32, message = "nqk,nkd->nqd"}> : () -> ()
    %cst_20 = arith.constant dense<0.000000e+00> : vector<8x8x8xf32>
    %77 = tpu.matmul %76, %59, %cst_20 {dimension_numbers = #tpu.dot_dimension_numbers<[2], [1], [1], [2], [0, 0, 0, 1, 1, 2], [0], [0]>} : vector<8x8x8xbf16>, vector<8x8x8xbf16>, vector<8x8x8xf32> -> vector<8x8x8xf32>
    "tpu.trace_stop"() : () -> ()
    %78 = vector.shape_cast %77 : vector<8x8x8xf32> to vector<2x4x8x8xf32>
    %79 = vector.extract_strided_slice %78 {offsets = [0, 0, 0, 0], sizes = [2, 1, 8, 8], strides = [1, 1, 1, 1]} : vector<2x4x8x8xf32> to vector<2x1x8x8xf32>
    %80 = vector.shape_cast %79 : vector<2x1x8x8xf32> to vector<2x8x8xf32>
    %81 = vector.shape_cast %80 : vector<2x8x8xf32> to vector<16x8xf32>
    %82 = vector.extract_strided_slice %78 {offsets = [0, 1, 0, 0], sizes = [2, 1, 8, 8], strides = [1, 1, 1, 1]} : vector<2x4x8x8xf32> to vector<2x1x8x8xf32>
    %83 = vector.shape_cast %82 : vector<2x1x8x8xf32> to vector<2x8x8xf32>
    %84 = vector.shape_cast %83 : vector<2x8x8xf32> to vector<16x8xf32>
    %85 = vector.extract_strided_slice %78 {offsets = [0, 2, 0, 0], sizes = [2, 1, 8, 8], strides = [1, 1, 1, 1]} : vector<2x4x8x8xf32> to vector<2x1x8x8xf32>
    %86 = vector.shape_cast %85 : vector<2x1x8x8xf32> to vector<2x8x8xf32>
    %87 = vector.shape_cast %86 : vector<2x8x8xf32> to vector<16x8xf32>
    %88 = vector.extract_strided_slice %78 {offsets = [0, 3, 0, 0], sizes = [2, 1, 8, 8], strides = [1, 1, 1, 1]} : vector<2x4x8x8xf32> to vector<2x1x8x8xf32>
    %89 = vector.shape_cast %88 : vector<2x1x8x8xf32> to vector<2x8x8xf32>
    %90 = vector.shape_cast %89 : vector<2x8x8xf32> to vector<16x8xf32>
    %91 = tpu.concatenate %81, %84, %87, %90 in 1 : vector<16x8xf32>, vector<16x8xf32>, vector<16x8xf32>, vector<16x8xf32> -> vector<16x32xf32>
    %92 = arith.truncf %91 : vector<16x32xf32> to vector<16x32xbf16>
    %c0_21 = arith.constant 0 : index
    %c0_22 = arith.constant 0 : index
    %c0_23 = arith.constant 0 : index
    %93 = vector.load %arg5[%c0_21, %c0_22, %c0_23] : memref<1x32x32xbf16, #tpu.memory_space<vmem>>, vector<1x32x32xbf16>
    %94 = vector.shape_cast %93 : vector<1x32x32xbf16> to vector<32x32xbf16>
    %cst_24 = arith.constant dense<0.000000e+00> : vector<16x32xf32>
    %95 = tpu.matmul %92, %94, %cst_24 {dimension_numbers = #tpu.dot_dimension_numbers<[1], [0], [0], [1], [0, 0, 1, 1], [], []>} : vector<16x32xbf16>, vector<32x32xbf16>, vector<16x32xf32> -> vector<16x32xf32>
    %96 = vector.broadcast %9 : vector<1x32xf32> to vector<16x32xf32>
    %97 = arith.addf %95, %96 : vector<16x32xf32>
    %98 = arith.addf %97, %4 : vector<16x32xf32>
    %cst_25 = arith.constant dense<0.000000e+00> : vector<16xf32>
    %99 = vector.multi_reduction <add>, %98, %cst_25 [1] : vector<16x32xf32> to vector<16xf32>
    %100 = vector.shape_cast %99 : vector<16xf32> to vector<16x1xf32>
    %cst_26 = arith.constant 3.200000e+01 : f32
    %101 = vector.broadcast %cst_26 : f32 to vector<16x1xf32>
    %102 = arith.divf %100, %101 : vector<16x1xf32>
    %103 = vector.broadcast %102 : vector<16x1xf32> to vector<16x32xf32>
    %104 = arith.subf %98, %103 : vector<16x32xf32>
    %105 = arith.mulf %104, %104 : vector<16x32xf32>
    %cst_27 = arith.constant dense<0.000000e+00> : vector<16xf32>
    %106 = vector.multi_reduction <add>, %105, %cst_27 [1] : vector<16x32xf32> to vector<16xf32>
    %107 = vector.shape_cast %106 : vector<16xf32> to vector<16x1xf32>
    %cst_28 = arith.constant 3.200000e+01 : f32
    %108 = vector.broadcast %cst_28 : f32 to vector<16x1xf32>
    %109 = arith.divf %107, %108 : vector<16x1xf32>
    %cst_29 = arith.constant 9.99999996E-13 : f32
    %110 = vector.broadcast %cst_29 : f32 to vector<16x1xf32>
    %111 = arith.addf %109, %110 : vector<16x1xf32>
    %112 = math.rsqrt %111 : vector<16x1xf32>
    %113 = vector.broadcast %112 : vector<16x1xf32> to vector<16x32xf32>
    %114 = arith.mulf %104, %113 : vector<16x32xf32>
    %115 = vector.broadcast %10 : vector<1x32xf32> to vector<16x32xf32>
    %116 = arith.mulf %114, %115 : vector<16x32xf32>
    %117 = vector.broadcast %11 : vector<1x32xf32> to vector<16x32xf32>
    %118 = arith.addf %116, %117 : vector<16x32xf32>
    %119 = arith.truncf %118 : vector<16x32xf32> to vector<16x32xbf16>
    %c0_30 = arith.constant 0 : index
    %c0_31 = arith.constant 0 : index
    %c0_32 = arith.constant 0 : index
    %120 = vector.load %arg6[%c0_30, %c0_31, %c0_32] : memref<1x32x64xbf16, #tpu.memory_space<vmem>>, vector<1x32x64xbf16>
    %121 = vector.shape_cast %120 : vector<1x32x64xbf16> to vector<32x64xbf16>
    %cst_33 = arith.constant dense<0.000000e+00> : vector<16x64xf32>
    %122 = tpu.matmul %119, %121, %cst_33 {dimension_numbers = #tpu.dot_dimension_numbers<[1], [0], [0], [1], [0, 0, 1, 1], [], []>} : vector<16x32xbf16>, vector<32x64xbf16>, vector<16x64xf32> -> vector<16x64xf32>
    %123 = vector.broadcast %12 : vector<1x64xf32> to vector<16x64xf32>
    %124 = arith.addf %122, %123 : vector<16x64xf32>
    %cst_34 = arith.constant 5.000000e-01 : f32
    %125 = vector.broadcast %cst_34 : f32 to vector<16x64xf32>
    %126 = arith.mulf %125, %124 : vector<16x64xf32>
    %cst_35 = arith.constant 0.707106769 : f32
    %127 = vector.broadcast %cst_35 : f32 to vector<16x64xf32>
    %128 = arith.mulf %124, %127 : vector<16x64xf32>
    %129 = math.erf %128 : vector<16x64xf32>
    %cst_36 = arith.constant 1.000000e+00 : f32
    %130 = vector.broadcast %cst_36 : f32 to vector<16x64xf32>
    %131 = arith.addf %130, %129 : vector<16x64xf32>
    %132 = arith.mulf %126, %131 : vector<16x64xf32>
    %133 = arith.truncf %132 : vector<16x64xf32> to vector<16x64xbf16>
    %c0_37 = arith.constant 0 : index
    %c0_38 = arith.constant 0 : index
    %c0_39 = arith.constant 0 : index
    %134 = vector.load %arg7[%c0_37, %c0_38, %c0_39] : memref<1x64x32xbf16, #tpu.memory_space<vmem>>, vector<1x64x32xbf16>
    %135 = vector.shape_cast %134 : vector<1x64x32xbf16> to vector<64x32xbf16>
    %cst_40 = arith.constant dense<0.000000e+00> : vector<16x32xf32>
    %136 = tpu.matmul %133, %135, %cst_40 {dimension_numbers = #tpu.dot_dimension_numbers<[1], [0], [0], [1], [0, 0, 1, 1], [], []>} : vector<16x64xbf16>, vector<64x32xbf16>, vector<16x32xf32> -> vector<16x32xf32>
    %137 = vector.broadcast %13 : vector<1x32xf32> to vector<16x32xf32>
    %138 = arith.addf %136, %137 : vector<16x32xf32>
    %139 = arith.addf %138, %118 : vector<16x32xf32>
    %cst_41 = arith.constant dense<0.000000e+00> : vector<16xf32>
    %140 = vector.multi_reduction <add>, %139, %cst_41 [1] : vector<16x32xf32> to vector<16xf32>
    %141 = vector.shape_cast %140 : vector<16xf32> to vector<16x1xf32>
    %cst_42 = arith.constant 3.200000e+01 : f32
    %142 = vector.broadcast %cst_42 : f32 to vector<16x1xf32>
    %143 = arith.divf %141, %142 : vector<16x1xf32>
    %144 = vector.broadcast %143 : vector<16x1xf32> to vector<16x32xf32>
    %145 = arith.subf %139, %144 : vector<16x32xf32>
    %146 = arith.mulf %145, %145 : vector<16x32xf32>
    %cst_43 = arith.constant dense<0.000000e+00> : vector<16xf32>
    %147 = vector.multi_reduction <add>, %146, %cst_43 [1] : vector<16x32xf32> to vector<16xf32>
    %148 = vector.shape_cast %147 : vector<16xf32> to vector<16x1xf32>
    %cst_44 = arith.constant 3.200000e+01 : f32
    %149 = vector.broadcast %cst_44 : f32 to vector<16x1xf32>
    %150 = arith.divf %148, %149 : vector<16x1xf32>
    %cst_45 = arith.constant 9.99999996E-13 : f32
    %151 = vector.broadcast %cst_45 : f32 to vector<16x1xf32>
    %152 = arith.addf %150, %151 : vector<16x1xf32>
    %153 = math.rsqrt %152 : vector<16x1xf32>
    %154 = vector.broadcast %153 : vector<16x1xf32> to vector<16x32xf32>
    %155 = arith.mulf %145, %154 : vector<16x32xf32>
    %156 = vector.broadcast %14 : vector<1x32xf32> to vector<16x32xf32>
    %157 = arith.mulf %155, %156 : vector<16x32xf32>
    %158 = vector.broadcast %15 : vector<1x32xf32> to vector<16x32xf32>
    %159 = arith.addf %157, %158 : vector<16x32xf32>
    %160 = vector.shape_cast %159 : vector<16x32xf32> to vector<2x8x32xf32>
    %c0_46 = arith.constant 0 : index
    %c0_47 = arith.constant 0 : index
    %c0_48 = arith.constant 0 : index
    %161 = vector.load %arg9[%c0_46, %c0_47, %c0_48] : memref<2x8x32xf32, #tpu.memory_space<vmem>>, vector<2x8x32xf32>
    tpu.vector_store %arg9[%c0_46, %c0_47, %c0_48], %160 {strides = array<i32>} : memref<2x8x32xf32, #tpu.memory_space<vmem>>, vector<2x8x32xf32>,
    return
  }
  func.func @transform_0(%arg0: i32, %arg1: i32) -> (i32, i32, i32) {
    %c0_i32 = arith.constant 0 : i32
    %c0_i32_0 = arith.constant 0 : i32
    %c0_i32_1 = arith.constant 0 : i32
    return %arg0, %c0_i32, %c0_i32_0 : i32, i32, i32
  }
  func.func @transform_1(%arg0: i32, %arg1: i32) -> (i32, i32, i32) {
    %c0_i32 = arith.constant 0 : i32
    %c0_i32_0 = arith.constant 0 : i32
    %c0_i32_1 = arith.constant 0 : i32
    return %arg0, %c0_i32, %c0_i32_0 : i32, i32, i32
  }
  func.func @transform_2(%arg0: i32, %arg1: i32) -> (i32, i32, i32) {
    %c0_i32 = arith.constant 0 : i32
    %c0_i32_0 = arith.constant 0 : i32
    %c0_i32_1 = arith.constant 0 : i32
    return %arg1, %c0_i32, %c0_i32_0 : i32, i32, i32
  }
  func.func @transform_3(%arg0: i32, %arg1: i32) -> (i32, i32, i32) {
    %c0_i32 = arith.constant 0 : i32
    %c0_i32_0 = arith.constant 0 : i32
    %c0_i32_1 = arith.constant 0 : i32
    return %arg1, %c0_i32, %c0_i32_0 : i32, i32, i32
  }
  func.func @transform_4(%arg0: i32, %arg1: i32) -> (i32, i32, i32) {
    %c0_i32 = arith.constant 0 : i32
    %c0_i32_0 = arith.constant 0 : i32
    %c0_i32_1 = arith.constant 0 : i32
    return %arg1, %c0_i32, %c0_i32_0 : i32, i32, i32
  }
  func.func @transform_5(%arg0: i32, %arg1: i32) -> (i32, i32, i32) {
    %c0_i32 = arith.constant 0 : i32
    %c0_i32_0 = arith.constant 0 : i32
    %c0_i32_1 = arith.constant 0 : i32
    return %arg1, %c0_i32, %c0_i32_0 : i32, i32, i32
  }
  func.func @transform_6(%arg0: i32, %arg1: i32) -> (i32, i32, i32) {
    %c0_i32 = arith.constant 0 : i32
    %c0_i32_0 = arith.constant 0 : i32
    %c0_i32_1 = arith.constant 0 : i32
    return %arg1, %c0_i32, %c0_i32_0 : i32, i32, i32
  }
  func.func @transform_7(%arg0: i32, %arg1: i32) -> (i32, i32, i32) {
    %c0_i32 = arith.constant 0 : i32
    %c0_i32_0 = arith.constant 0 : i32
    %c0_i32_1 = arith.constant 0 : i32
    return %arg0, %c0_i32, %c0_i32_0 : i32, i32, i32
  }
  func.func @transform_8(%arg0: i32, %arg1: i32) -> (i32, i32, i32, i32) {
    %c0_i32 = arith.constant 0 : i32
    %c0_i32_0 = arith.constant 0 : i32
    %c0_i32_1 = arith.constant 0 : i32
    return %arg0, %arg1, %c0_i32, %c0_i32_0 : i32, i32, i32, i32
  }
}

</mosaic_0001>

<bundles_post_ra>
// kernel: tpu_custom_call.1
= control target key start
LH: loop header
LB: loop body
LE: loop exit
PB: predicated region body
PF: predicated region fallthrough
CT: control target
= control target key end

     0   :  { %s3118_s0 = inlined_call_operand.hbm [shape: f32[2,8,32], index: 0, kind: input, shape index: {}]   ;;  %s3119_s1 = inlined_call_operand.vmem [shape: f32[2,1,8], index: 1, kind: input, shape index: {}]   ;;  %s3120_s2 = inlined_call_operand.vmem [shape: bf16[2,32,96], index: 2, kind: input, shape index: {}]   ;;  %s3121_s3 = inlined_call_operand.vmem [shape: bf16[2,32,32], index: 3, kind: input, shape index: {}]   ;;  %s3122_s4 = inlined_call_operand.vmem [shape: bf16[2,32,64], index: 4, kind: input, shape index: {}]   ;;  %s3123_s5 = inlined_call_operand.vmem [shape: bf16[2,64,32], index: 5, kind: input, shape index: {}]   ;;  %s3124_s6 = inlined_call_operand.vmem [shape: f32[2,8,96], index: 6, kind: input, shape index: {}]   ;;  %s3125_s7 = inlined_call_operand.hbm [shape: f32[2,8,32], index: 7, kind: output, shape index: {0}]   ;;  %s3126_s8 = inlined_call_operand.hbm [shape: f32[2,8,8,8], index: 8, kind: output, shape index: {1}]  }
   0x1   :  { %3141 = sst [smem:[#allocation20_spill]] %s3118_s0 }
   0x2   :  { %14 = vsyncpa [#allocation3], 0 }
   0x3   :  { %15 = vsyncpa [#allocation4], 0 }
   0x4   :  { %16 = vsyncpa [#allocation7], 0 }
   0x5   :  { %18 = vsyncpa [#allocation7 + $0x1], 0  ;;  %s2638_s27 = smov 0   ;;  %s2640_s28 = smov 0  }
   0x6   :  { %s2642_s29 = smov 0   ;;  %s2644_s30 = smov 0  }
   0x7   :  { %s2646_s9 = smov 0   ;;  %s2648_s10 = smov 0  }
   0x8 LB: > { %3142 = sst [smem:[#allocation13_spill]] %s2549_s27  ;;  %s2047_s11 = sadd.s32 4294967295, %s2569_s10   ;;  %s2569_s10 = sphi %s2648_s10, %s24_s10   ;;  %s2565_s9 = sphi %s2646_s9, %s3168_s9   ;;  %s2561_s30 = sphi %s2644_s30, %s3167_s30   ;;  %s2557_s29 = sphi %s2642_s29, %s3166_s29   ;;  %s2553_s28 = sphi %s2640_s28, %s3170_s28   ;;  %s2549_s27 = sphi %s2638_s27, %s3169_s27  }
   0x9   : > { %3143 = sst [smem:[#allocation14_spill]] %s2557_s29  ;;  %s2048_s12 = sadd.s32 4294967294, %s2569_s10  }
   0xa   : > { %3144 = sst [smem:[#allocation15_spill]] %s2565_s9  ;;  %s33_s13 = sadd.s32 1, %s2565_s9 }
   0xb   : > { %3145 = sst [smem:[#allocation16_spill]] %s2569_s10  ;;  %s253_s14 = sadd.s32 1, %s2557_s29 }
   0xc   : > { %p34_p0 = scmp.ge.s32.totalorder %s33_s13, 2  ;;  %p263_p1 = scmp.ne.s32.totalorder %s2557_s29, %s2553_s28 }
   0xd   : > { %p2674_p2 = scmp.eq.s32.totalorder %s2047_s11, 1  ;;  %p269_p3 = scmp.ne.s32.totalorder %s2553_s28, %s2549_s27 }
   0xe   : > { %s3172_s13 = smov (%p34_p0, %s33_s13), 0  ;;  %p270_p5 = scmp.eq.s32.totalorder %s2048_s12, 1 }
   0xf   : > { %s3146_s15 = scalar_select %p2674_p2, 1, 0 }
  0x10   : > { %3147 = sst [smem:[#allocation17_spill]] %s3172_s13  ;;  %p2684_p4 = por %p2674_p2, %p263_p1 }
  0x11   : > { %s249_s17 = ssub.s32 %s2565_s9, %s3172_s13  ;;  %p2049_p6 = scmp.ge.s32.totalorder %s2569_s10, 1 }
  0x12   : > { %s3148_s16 = scalar_select %p2684_p4, 1, 0 }
  0x13   : > { %p251_p7 = scmp.eq.s32.totalorder %s249_s17, 0  ;;  %p2691_p8 = por %p270_p5, %p269_p3 }
  0x14   : > { %p277_p9 = scmp.lt.s32.totalorder %s2569_s10, 3  ;;  %p2703_p11 = scmp.eq.s32.totalorder %s2047_s11, 0 }
  0x15   : > { %s3149_s18 = scalar_select %p2691_p8, 1, 0 }
  0x16   : > { %s2697_s19 = scalar_select %p251_p7, %s2557_s29, %s253_s14  }
  0x17   : > { %3150 = sst [smem:[#allocation18_spill]] %s3149_s18  ;;  %p2699_p10 = pnand %p2049_p6, %p277_p9 }
  0x18   : > { %3151 = sst [smem:[#allocation19_spill]] %s2697_s19  ;;  %s2571_s22 = smov [#allocation2]  }
  0x19   : > { %s3152_s20 = scalar_select %p2699_p10, 1, 0 }
  0x1a   : > { %s3153_s21 = scalar_select %p2703_p11, 1, 0 }
  0x1b   : > { %p2304_p12 = pneg %p2699_p10  ;;  %s292_s23 = sshll.u32 %s2571_s22, 4  ;;  %s293_s23 = int_to_ptr.vmem [resolvable:$true] %s292_s23 }
  0x1c   : > { %s3155_s0 = sld [smem:[#allocation20_spill]] }
  0x1d   : > { %p2711_p13 = pnand %p2703_p11, %p2304_p12 }
  0x1f   : > { %p2459_p1 = pneg %p2711_p13 }
  0x22   : > { %s2457_s12 = scalar_lea.hbm %s3155_s0, 256 }
  0x23   : > { %p2458_p0 = scmp.ne.s32.totalorder %s3155_s0, %s2457_s12  ;;  %p2464_p6 = scmp.lt.u32.totalorder %s2457_s12, %s3155_s0 }
  0x25   : > { %p2460_p3 = pnand %p2459_p1, %p2458_p0 }
  0x27   : > { %p2461_p5 = pneg %p2460_p3 }
  0x29   : > { %p2466_p7 = pnand %p2464_p6, %p2461_p5 }
  0x2b   : > { %2469 = shalt.err (!%p2466_p7)
}
  0x2c   : > { %s2470_s13 = scalar_lea.vmem %s293_s23, 256  ;;  %p2478_p4 = scmp.lt.s32.totalorder %s293_s23, %s293_s23 }
  0x2d   : > { %p2471_p9 = scmp.ne.s32.totalorder %s293_s23, %s2470_s13  ;;  %p2479_p2 = scmp.lt.s32.totalorder %s2470_s13, %s2470_s13 }
  0x2f   : > { %p2473_p12 = pnand %p2471_p9, %p2459_p1  ;;  %p2480_p11 = por %p2479_p2, %p2478_p4 }
  0x31   : > { %p2474_p8 = pneg %p2473_p12 }
  0x33   : > { %p2481_p10 = pnand %p2480_p11, %p2474_p8 }
  0x35   : > { %2484 = shalt.err (!%p2481_p10)
}
  0x36   : > { %s2572_s25 = smov 128   ;;  %s2573_s26 = smov 8  }
  0x37   : > { %2307 = dma.hbm_to_vmem [thread:$0]  (!%p2711_p13), %s3155_s0, 256, %s293_s23, [#allocation3], %s2572_s25, %s2572_s25, %s2573_s26  }
  0x38   : > { %p3156_p0 = scmp.ne.s32.totalorder %s3152_s20, 0 }
  0x39   : > { %p3157_p3 = scmp.ne.s32.totalorder (!%p3156_p0), %s3153_s21, 0 }
  0x3a   : > { %355 = sbr.rel (%p3156_p0) target bundleno = 2800 (0xaf0), region = 48 }
  0x41   : > { %2536 = dma.done.wait (%p3157_p3), [#allocation3], 256  }
  0x42   : > { %2538 = vsyncadd (%p3157_p3), [#allocation3], 4294967040  ;;  %s3136_s13 = sand.u32 1, %s2553_s28   ;;  %p418_p2 = scmp.lt.s32.totalorder %s2561_s30, 1 }
  0x43   : > { %s2055_s24 = sshll.u32 %s3136_s13, 6  ;;  %p2065_p4 = scmp.ne.s32.totalorder %s2561_s30, 0 }
  0x44   : > { %s419_s12 = scalar_select %p418_p2, %s2561_s30, 1 }
  0x45   : > { %s2765_s20 = scalar_lea.vmem [#allocation6], %s2055_s24  ;;  %449 = sbr.rel (%p2065_p4) target bundleno = 76 (0x4c), region = 56  ;;  %v450_v0 = vld [vmem:[#allocation2] sm:$0xff] (!%p2065_p4)  ;;  %vm452_vm0 = vcmask (!%p2065_p4), 261120   ;;  %v451_v1 = vld [vmem:[#allocation2 + $0x8] sm:$0xff] (!%p2065_p4) }
  0x46   : > { %s2105_s17 = sshll.u32 %s419_s12, 4  ;;  %s2108_s23 = sshll.u32 %s419_s12, 5  ;;  %453 = vst.msk [vmem:[#allocation5] sm:$0xff] (!%p2065_p4), %vm452_vm0, %v450_v0  ;;  %454 = vst.msk [vmem:[#allocation5 + $0x8] sm:$0xff] (!%p2065_p4), %vm452_vm0, %v451_v1 }
  0x47   : > { %s422_s25 = scalar_lea.vmem %s3120_s2, %s2105_s17  ;;  %s2748_s21 = scalar_lea.vmem %s3121_s3, %s2105_s17 }
  0x48   : > { %s2753_s9 = scalar_lea.vmem %s3122_s4, %s2105_s17  ;;  %s2758_s13 = scalar_lea.vmem %s3123_s5, %s2108_s23 }
  0x49   : > { %s2064_s18 = sshll.u32 %s419_s12, 3 }
  0x4a   : > { %s2763_s22 = scalar_lea.vmem %s3124_s6, %s2064_s18 }
  0x4c PF: > { %v2402_v2 = vld [vmem:[%s422_s25] sm:$0xff]   ;;  %v2574_v3 = vmov 0.0   ;;  %v2403_v4 = vld [vmem:[%s422_s25 + $0x8] sm:$0xff]   ;;  %vm2575_vm1 = vmmov 0   ;;  %vm481_vm2 = vcmask 261120   ;;  %v465_v8 = vlaneseq  ;;  %s2576_s0 = smov 104  }
  0x4d   : > { %2156 = vmatprep.subr.bf16.mxu0 %v2574_v3  ;;  %2164 = vmatprep.subr.bf16.mxu1 %v2574_v3  ;;  %v2772_v5 = vld [vmem:[#allocation5] sm:$0xff]  ;;  %v2774_v6 = vld [vmem:[#allocation5 + $0x8] sm:$0xff]  ;;  %v2789_v11 = vld [vmem:[%s2763_s22] sm:$0xff]  ;;  %s2577_s27 = smov 120   ;;  %s2578_s29 = smov 112   ;;  %vm587_vm3 = vcmask 64512  }
  0x4e   : > { %2157 = vmatpush3.bf16.msra.mxu0 %v2402_v2  ;;  %2160 = vmatprep.mubr.msk.bf16.mxu0 %vm2575_vm1, %v2574_v3  ;;  %v460_v7 = vpack.c.bf16 %v2774_v6, %v2772_v5  ;;  %v2785_v9 = vshrl.u32 %v465_v8, 7  ;;  %s2579_s10 = smov 96   ;;  %s2580_s18 = smov 64   ;;  %vm1106_vm4 = vcmask 1043456   ;;  %vm1512_vm5 = vcmask 130048  }
  0x4f   : > { %2158 = vmatprep.subr.bf16.mxu0 %v2574_v3  ;;  %2166 = vmatprep.mubr.msk.bf16.mxu1 %vm2575_vm1, %v2574_v3  ;;  %s2581_s23 = smov 8   ;;  %s2582_s25 = smov 16   ;;  %vm1515_vm6 = vcmask 195584   ;;  %vm1736_vm7 = vcmask 523264  }
  0x50   : > { %v467_v10 = vsub.s32 0, %v2785_v9  ;;  %s2583_s26 = smov 24   ;;  %p3158_p10 = scmp.ne.s32.totalorder %s3146_s15, 0 }
  0x52   : > { %2159 = vmatpush3.bf16.msra.mxu0 %v2403_v4  ;;  %v468_v12 = vrot.slane %v2789_v11, %v467_v10  ;;  %v2077_v4 = vld [vmem:[%s3119_s1] ss:$0 sm:$0xff] }
  0x53   : > { %2170 = vmatprep.subr.bf16.mxu0 %v2574_v3 }
  0x55   : > { %2161 = vmatmul.mubr.msk.bf16.vlgmr.msra.gmra.mrb[0].mxu0 %vm481_vm2, %v460_v7 }
  0x56   : > { %2172 = vmatprep.mubr.msk.bf16.mxu0 %vm2575_vm1, %v2574_v3 }
 0x128   : > { %v519_v13 = vpop.f32.mrb[0].mxu0 }
 0x129   : > { %v520_v14 = vadd.f32 %v519_v13, %v468_v12  ;;  %v2162_v15 = vpop.f32.mrb[1].mxu0 }
 0x12a   : > { %v522_v16 = vpop.f32.mrb[2].mxu0 }
 0x12b   : > { %570 = vrot.lane.b32.xlu1 %v520_v14, %s2576_s0  ;;  %558 = vrot.lane.b32.xlu0 %v520_v14, %s2577_s27  ;;  %v2163_v17 = vpop.f32.mrb[3].mxu0  ;;  %v523_v18 = vadd.f32 %v522_v16, %v468_v12  ;;  %v576_v19 = vpack.c.bf16 %v520_v14, %v520_v14  ;;  %v526_v20 = vmul.f32 0.35355338, %v520_v14 }
 0x12d   : > { %v2821_v33 = vpack.c.bf16 %v523_v18, %v523_v18  ;;  %v527_v34 = vmul.f32 0.35355338, %v523_v18  ;;  %v548_v36 = vpack.c.bf16 %v526_v20, %v526_v20 }
 0x12f   : > { %564 = vrot.lane.b32.xlu0 %v520_v14, %s2578_s29  ;;  %560 = vrot.lane.b32.xlu1 %v523_v18, %s2577_s27  ;;  %v552_v56 = vpack.c.bf16 %v527_v34, %v527_v34 }
 0x133   : > { %566 = vrot.lane.b32.xlu0 %v523_v18, %s2578_s29  ;;  %572 = vrot.lane.b32.xlu1 %v523_v18, %s2576_s0 }
 0x137   : > { %585 = vrot.lane.b32.xlu0 %v576_v19, %s2579_s10 }
 0x13b   : > { %530 = vrot.lane.b32.xlu0 %v526_v20, %s2577_s27 }
 0x19d   : > { %v571_v21 = vpop.permute.xlu1 %570  ;;  %v559_v22 = vpop.permute.xlu0 %558 }
 0x19e   : > { %v2800_v23 = vpack.c.bf16 %v571_v21, %v571_v21  ;;  %v2802_v24 = vpack.c.bf16 %v559_v22, %v559_v22 }
 0x1a0   : > { %733 = vrot.lane.b32.xlu0 %v2800_v23, %s2579_s10  ;;  %635 = vrot.lane.b32.xlu1 %v2802_v24, %s2579_s10 }
 0x1a1   : > { %v565_v25 = vpop.permute.xlu0 %564  ;;  %v561_v27 = vpop.permute.xlu1 %560 }
 0x1a2   : > { %v2808_v26 = vpack.c.bf16 %v565_v25, %v565_v25  ;;  %v2813_v29 = vpack.c.bf16 %v561_v27, %v561_v27 }
 0x1a4   : > { %542 = vrot.lane.b32.xlu0 %v526_v20, %s2576_s0  ;;  %684 = vrot.lane.b32.xlu1 %v2808_v26, %s2579_s10 }
 0x1a5   : > { %v567_v28 = vpop.permute.xlu0 %566  ;;  %v573_v35 = vpop.permute.xlu1 %572 }
 0x1a6   : > { %v2818_v31 = vpack.c.bf16 %v567_v28, %v567_v28  ;;  %v2830_v37 = vpack.c.bf16 %v573_v35, %v573_v35 }
 0x1a8   : > { %536 = vrot.lane.b32.xlu1 %v526_v20, %s2578_s29  ;;  %831 = vrot.lane.b32.xlu0 %v2813_v29, %s2579_s10 }
 0x1a9   : > { %v586_v30 = vpop.permute.xlu0 %585 }
 0x1aa   : > { %v592_v32 = vsel %vm587_vm3, %v586_v30, 0 }
 0x1ab   : > { %2165 = vmatpush3.bf16.xpose.msra.mxu1 %v592_v32 }
 0x1ac   : > { %880 = vrot.lane.b32.xlu0 %v2818_v31, %s2579_s10  ;;  %782 = vrot.lane.b32.xlu1 %v2821_v33, %s2579_s10 }
 0x1ad   : > { %2176 = vmatprep.subr.bf16.mxu1 %v2574_v3  ;;  %v531_v38 = vpop.permute.xlu0 %530 }
 0x1ae   : > { %v549_v45 = vpack.c.bf16 %v531_v38, %v531_v38  ;;  %v2078_v38 = vld [vmem:[%s3119_s1 + $0x1] ss:$0 sm:$0xff] }
 0x1b0   : > { %538 = vrot.lane.b32.xlu0 %v527_v34, %s2578_s29  ;;  %532 = vrot.lane.b32.xlu1 %v527_v34, %s2577_s27 }
 0x1b2   : > { %2167 = vmatmul.mubr.msk.bf16.vlgmr.msra.gmra.mrb[0].mxu1 %vm587_vm3, %v548_v36 }
 0x1b3   : > { %2178 = vmatprep.mubr.msk.bf16.mxu1 %vm2575_vm1, %v2574_v3 }
 0x1b4   : > { %929 = vrot.lane.b32.xlu1 %v2830_v37, %s2579_s10 }
 0x1b8   : > { %544 = vrot.lane.b32.xlu1 %v527_v34, %s2576_s0 }
 0x1bc   : > { %1101 = vrot.lane.b32.xlu1 %v576_v19, %s2580_s18 }
 0x212   : > { %v734_v39 = vpop.permute.xlu0 %733  ;;  %v636_v40 = vpop.permute.xlu1 %635 }
 0x213   : > { %v641_v41 = vsel %vm587_vm3, %v636_v40, 0  ;;  %v739_v47 = vsel %vm587_vm3, %v734_v39, 0 }
 0x214   : > { %2171 = vmatpush3.bf16.xpose.msra.mxu0 %v641_v41 }
 0x215   : > { %2182 = vmatprep.subr.bf16.mxu0 %v2574_v3 }
 0x216   : > { %v685_v42 = vpop.permute.xlu1 %684  ;;  %v543_v44 = vpop.permute.xlu0 %542 }
 0x217   : > { %v690_v43 = vsel %vm587_vm3, %v685_v42, 0  ;;  %v551_v52 = vpack.c.bf16 %v543_v44, %v543_v44 }
 0x218   : > { %2177 = vmatpush3.bf16.xpose.msra.mxu1 %v690_v43 }
 0x219   : > { %2188 = vmatprep.subr.bf16.mxu1 %v2574_v3 }
 0x21a   : > { %v537_v46 = vpop.permute.xlu1 %536  ;;  %v832_v49 = vpop.permute.xlu0 %831 }
 0x21b   : > { %2173 = vmatmul.mubr.msk.bf16.vlgmr.msra.gmra.mrb[4].mxu0 %vm587_vm3, %v549_v45  ;;  %v550_v48 = vpack.c.bf16 %v537_v46, %v537_v46  ;;  %v837_v54 = vsel %vm587_vm3, %v832_v49, 0 }
 0x21c   : > { %2183 = vmatpush3.bf16.xpose.msra.mxu0 %v739_v47  ;;  %2184 = vmatprep.mubr.msk.bf16.mxu0 %vm2575_vm1, %v2574_v3 }
 0x21d   : > { %2194 = vmatprep.subr.bf16.mxu0 %v2574_v3 }
 0x21e   : > { %v783_v50 = vpop.permute.xlu1 %782  ;;  %v881_v55 = vpop.permute.xlu0 %880 }
 0x21f   : > { %v788_v51 = vsel %vm587_vm3, %v783_v50, 0  ;;  %2179 = vmatmul.mubr.msk.bf16.vlgmr.msra.gmra.mrb[4].mxu1 %vm587_vm3, %v550_v48  ;;  %v886_v58 = vsel %vm587_vm3, %v881_v55, 0 }
 0x220   : > { %2189 = vmatpush3.bf16.xpose.msra.mxu1 %v788_v51  ;;  %2190 = vmatprep.mubr.msk.bf16.mxu1 %vm2575_vm1, %v2574_v3 }
 0x221   : > { %2200 = vmatprep.subr.bf16.mxu1 %v2574_v3 }
 0x222   : > { %v533_v53 = vpop.permute.xlu1 %532  ;;  %v539_v60 = vpop.permute.xlu0 %538 }
 0x223   : > { %2185 = vmatmul.mubr.msk.bf16.vlgmr.msra.gmra.mrb[8].mxu0 %vm587_vm3, %v551_v52  ;;  %v553_v59 = vpack.c.bf16 %v533_v53, %v533_v53  ;;  %v554_v63 = vpack.c.bf16 %v539_v60, %v539_v60 }
 0x224   : > { %2195 = vmatpush3.bf16.xpose.msra.mxu0 %v837_v54  ;;  %2196 = vmatprep.mubr.msk.bf16.mxu0 %vm2575_vm1, %v2574_v3 }
 0x225   : > { %2206 = vmatprep.subr.bf16.mxu0 %v2574_v3 }
 0x226   : > { %v930_v57 = vpop.permute.xlu1 %929 }
 0x227   : > { %2191 = vmatmul.mubr.msk.bf16.vlgmr.msra.gmra.mrb[8].mxu1 %vm587_vm3, %v552_v56  ;;  %v935_v62 = vsel %vm587_vm3, %v930_v57, 0 }
 0x228   : > { %2201 = vmatpush3.bf16.xpose.msra.mxu1 %v886_v58  ;;  %2202 = vmatprep.mubr.msk.bf16.mxu1 %vm2575_vm1, %v2574_v3 }
 0x229   : > { %2212 = vmatprep.subr.bf16.mxu1 %v2574_v3 }
 0x22a   : > { %v545_v61 = vpop.permute.xlu1 %544 }
 0x22b   : > { %2197 = vmatmul.mubr.msk.bf16.vlgmr.msra.gmra.mrb[12].mxu0 %vm587_vm3, %v553_v59  ;;  %v555_v2 = vpack.c.bf16 %v545_v61, %v545_v61 }
 0x22c   : > { %2207 = vmatpush3.bf16.xpose.msra.mxu0 %v935_v62  ;;  %2208 = vmatprep.mubr.msk.bf16.mxu0 %vm2575_vm1, %v2574_v3 }
 0x22d   : > { %2218 = vmatprep.subr.bf16.mxu0 %v2574_v3 }
 0x22e   : > { %v1102_v0 = vpop.permute.xlu1 %1101 }
 0x22f   : > { %v1108_v1 = vsel %vm1106_vm4, %v1102_v0, 0  ;;  %2203 = vmatmul.mubr.msk.bf16.vlgmr.msra.gmra.mrb[12].mxu1 %vm587_vm3, %v554_v63 }
 0x230   : > { %2213 = vmatpush3.bf16.msra.mxu1 %v1108_v1  ;;  %2214 = vmatprep.mubr.msk.bf16.mxu1 %vm2575_vm1, %v2574_v3 }
 0x231   : > { %2224 = vmatprep.subr.bf16.mxu1 %v2574_v3 }
 0x233   : > { %2209 = vmatmul.mubr.msk.bf16.vlgmr.msra.gmra.mrb[16].mxu0 %vm587_vm3, %v555_v2 }
 0x234   : > { %2220 = vmatprep.mubr.msk.bf16.mxu0 %vm2575_vm1, %v2574_v3 }
 0x285   : > { %v628_v7 = vpop.f32.mrb[0].mxu1 }
 0x286   : > { %v989_v8 = vadd.f32 %v2077_v4, %v628_v7  ;;  %v2168_v10 = vpop.f32.mrb[1].mxu1 }
 0x287   : > { %v631_v12 = vpop.f32.mrb[2].mxu1 }
 0x288   : > { %v2169_v13 = vpop.f32.mrb[3].mxu1  ;;  %v997_v14 = vsel %vm587_vm3, %v989_v8, -inf }
 0x289   : > { %998 = vmax.xlane.f32.xlu0 %v997_v14 }
 0x2ee   : > { %v677_v15 = vpop.f32.mrb[4].mxu0 }
 0x2ef   : > { %v990_v16 = vadd.f32 %v2077_v4, %v677_v15  ;;  %v2174_v17 = vpop.f32.mrb[5].mxu0 }
 0x2f0   : > { %v680_v18 = vpop.f32.mrb[6].mxu0 }
 0x2f1   : > { %v2175_v19 = vpop.f32.mrb[7].mxu0  ;;  %v1000_v20 = vsel %vm587_vm3, %v990_v16, -inf }
 0x2f2   : > { %v726_v21 = vpop.f32.mrb[4].mxu1  ;;  %1001 = vmax.xlane.f32.xlu1 %v1000_v20 }
 0x2f3   : > { %v991_v22 = vadd.f32 %v2077_v4, %v726_v21  ;;  %v2180_v25 = vpop.f32.mrb[5].mxu1 }
 0x2f4   : > { %v729_v27 = vpop.f32.mrb[6].mxu1 }
 0x2f5   : > { %v2181_v28 = vpop.f32.mrb[7].mxu1  ;;  %v1003_v30 = vsel %vm587_vm3, %v991_v22, -inf }
 0x2f6   : > { %1004 = vmax.xlane.f32.xlu0 %v1003_v30  ;;  %v775_v32 = vpop.f32.mrb[8].mxu0 }
 0x2f7   : > { %v992_v34 = vadd.f32 %v2077_v4, %v775_v32  ;;  %v2186_v35 = vpop.f32.mrb[9].mxu0 }
 0x2f8   : > { %v778_v36 = vpop.f32.mrb[10].mxu0 }
 0x2f9   : > { %v2187_v39 = vpop.f32.mrb[11].mxu0  ;;  %v1006_v40 = vsel %vm587_vm3, %v992_v34, -inf }
 0x2fa   : > { %v824_v41 = vpop.f32.mrb[8].mxu1  ;;  %1007 = vmax.xlane.f32.xlu0 %v1006_v40 }
 0x2fb   : > { %v2886_v42 = vadd.f32 %v2078_v38, %v824_v41  ;;  %v2192_v43 = vpop.f32.mrb[9].mxu1 }
 0x2fc   : > { %v827_v44 = vpop.f32.mrb[10].mxu1 }
 0x2fd   : > { %v2193_v45 = vpop.f32.mrb[11].mxu1  ;;  %v1009_v46 = vsel %vm587_vm3, %v2886_v42, -inf }
 0x2fe   : > { %1010 = vmax.xlane.f32.xlu1 %v1009_v46  ;;  %v873_v47 = vpop.f32.mrb[12].mxu0 }
 0x2ff   : > { %v2890_v48 = vadd.f32 %v2078_v38, %v873_v47  ;;  %v2198_v49 = vpop.f32.mrb[13].mxu0 }
 0x300   : > { %v876_v50 = vpop.f32.mrb[14].mxu0 }
 0x301   : > { %v2199_v51 = vpop.f32.mrb[15].mxu0  ;;  %v1012_v52 = vsel %vm587_vm3, %v2890_v48, -inf }
 0x302   : > { %v922_v53 = vpop.f32.mrb[12].mxu1  ;;  %1013 = vmax.xlane.f32.xlu0 %v1012_v52 }
 0x303   : > { %v995_v54 = vadd.f32 %v2078_v38, %v922_v53  ;;  %v2204_v55 = vpop.f32.mrb[13].mxu1 }
 0x304   : > { %v925_v56 = vpop.f32.mrb[14].mxu1 }
 0x305   : > { %v2205_v57 = vpop.f32.mrb[15].mxu1  ;;  %v1015_v58 = vsel %vm587_vm3, %v995_v54, -inf }
 0x306   : > { %1016 = vmax.xlane.f32.xlu1 %v1015_v58  ;;  %v971_v59 = vpop.f32.mrb[16].mxu0 }
 0x307   : > { %v996_v60 = vadd.f32 %v2078_v38, %v971_v59  ;;  %v2210_v61 = vpop.f32.mrb[17].mxu0 }
 0x308   : > { %v974_v62 = vpop.f32.mrb[18].mxu0 }
 0x309   : > { %v2211_v63 = vpop.f32.mrb[19].mxu0  ;;  %v1018_v0 = vsel %vm587_vm3, %v996_v60, -inf }
 0x30a   : > { %1019 = vmax.xlane.f32.xlu0 %v1018_v0 }
 0x316   : > { %v999_v1 = vpop.xlane.xlu0 %998 }
 0x317   : > { %1198 = vrot.lane.b32.xlu1 %v2808_v26, %s2580_s18  ;;  %v1021_v2 = vsub.f32 %v989_v8, %v999_v1 }
 0x319   : > { %v1029_v4 = vmul.f32 1.442695, %v1021_v2 }
 0x31b   : > { %1246 = vrot.lane.b32.xlu1 %v2800_v23, %s2580_s18  ;;  %2412 = vpow2.f32 %v1029_v4 }
 0x320   : > { %1150 = vrot.lane.b32.xlu0 %v2802_v24, %s2580_s18 }
 0x325   : > { %v2902_v7 = vpop.eup %2412 }
 0x326   : > { %v1045_v10 = vsel %vm587_vm3, %v2902_v7, 0.0 }
 0x33f   : > { %1046 = vadd.xlane.f32.xlu1 %v1045_v10 }
 0x37f   : > { %v1002_v12 = vpop.xlane.xlu1 %1001 }
 0x380   : > { %v1022_v13 = vsub.f32 %v990_v16, %v1002_v12 }
 0x382   : > { %v1031_v14 = vmul.f32 1.442695, %v1022_v13 }
 0x383   : > { %v1005_v26 = vpop.xlane.xlu0 %1004 }
 0x384   : > { %2414 = vpow2.f32 %v1031_v14  ;;  %v1023_v15 = vsub.f32 %v991_v22, %v1005_v26 }
 0x386   : > { %v1033_v23 = vmul.f32 1.442695, %v1023_v15 }
 0x387   : > { %v1008_v17 = vpop.xlane.xlu0 %1007 }
 0x388   : > { %2416 = vpow2.f32 %v1033_v23  ;;  %v1024_v24 = vsub.f32 %v992_v34, %v1008_v17 }
 0x38a   : > { %v1035_v18 = vmul.f32 1.442695, %v1024_v24 }
 0x38b   : > { %v1011_v32 = vpop.xlane.xlu1 %1010 }
 0x38c   : > { %2418 = vpow2.f32 %v1035_v18  ;;  %v1025_v34 = vsub.f32 %v2886_v42, %v1011_v32 }
 0x38e   : > { %v2906_v8 = vpop.eup %2414  ;;  %v1037_v38 = vmul.f32 1.442695, %v1025_v34 }
 0x38f   : > { %v1048_v19 = vsel %vm587_vm3, %v2906_v8, 0.0  ;;  %v1014_v21 = vpop.xlane.xlu0 %1013 }
 0x390   : > { %1049 = vadd.xlane.f32.xlu0 %v1048_v19  ;;  %v1026_v36 = vsub.f32 %v2890_v48, %v1014_v21  ;;  %2420 = vpow2.f32 %v1037_v38 }
 0x392   : > { %v2910_v20 = vpop.eup %2416  ;;  %v1039_v40 = vmul.f32 1.442695, %v1026_v36 }
 0x393   : > { %v1051_v16 = vsel %vm587_vm3, %v2910_v20, 0.0  ;;  %v1017_v35 = vpop.xlane.xlu1 %1016 }
 0x394   : > { %1052 = vadd.xlane.f32.xlu1 %v1051_v16  ;;  %v1027_v39 = vsub.f32 %v995_v54, %v1017_v35  ;;  %2422 = vpow2.f32 %v1039_v40 }
 0x396   : > { %v2914_v22 = vpop.eup %2418  ;;  %v1041_v41 = vmul.f32 1.442695, %v1027_v39 }
 0x397   : > { %v1020_v25 = vpop.xlane.xlu0 %1019  ;;  %v1054_v27 = vsel %vm587_vm3, %v2914_v22, 0.0  ;;  %v1199_v45 = vpop.permute.xlu1 %1198 }
 0x398   : > { %1055 = vadd.xlane.f32.xlu0 %v1054_v27  ;;  %v1028_v43 = vsub.f32 %v996_v60, %v1020_v25  ;;  %2424 = vpow2.f32 %v1041_v41  ;;  %v1204_v56 = vsel %vm1106_vm4, %v1199_v45, 0 }
 0x39a   : > { %v1043_v44 = vmul.f32 1.442695, %v1028_v43 }
 0x39b   : > { %v1151_v28 = vpop.permute.xlu0 %1150  ;;  %v1247_v42 = vpop.permute.xlu1 %1246 }
 0x39c   : > { %v1156_v30 = vsel %vm1106_vm4, %v1151_v28, 0  ;;  %2426 = vpow2.f32 %v1043_v44 }
 0x39d   : > { %2219 = vmatpush3.bf16.msra.mxu0 %v1156_v30 }
 0x39e   : > { %2230 = vmatprep.subr.bf16.mxu0 %v2574_v3 }
 0x3a5   : > { %1342 = vrot.lane.b32.xlu1 %v2813_v29, %s2580_s18  ;;  %v2926_v29 = vpop.eup %2420 }
 0x3a6   : > { %v1057_v46 = vsel %vm587_vm3, %v2926_v29, 0.0 }
 0x3ae   : > { %1294 = vrot.lane.b32.xlu0 %v2821_v33, %s2580_s18  ;;  %v2928_v33 = vpop.eup %2422 }
 0x3af   : > { %v2932_v47 = vpop.eup %2424  ;;  %v1060_v50 = vsel %vm587_vm3, %v2928_v33, 0.0 }
 0x3b0   : > { %v1063_v49 = vsel %vm587_vm3, %v2932_v47, 0.0  ;;  %v2938_v51 = vpop.eup %2426 }
 0x3b1   : > { %v1066_v52 = vsel %vm587_vm3, %v2938_v51, 0.0 }
 0x3c9   : > { %1058 = vadd.xlane.f32.xlu1 %v1057_v46 }
 0x3cc   : > { %v1047_v48 = vpop.xlane.xlu1 %1046 }
 0x3cd   : > { %2428 = vrcp.f32 %v1047_v48  ;;  %1064 = vadd.xlane.f32.xlu1 %v1063_v49  ;;  %1061 = vadd.xlane.f32.xlu0 %v1060_v50 }
 0x3d1   : > { %1067 = vadd.xlane.f32.xlu0 %v1066_v52  ;;  %v2404_v52 = vld [vmem:[%s2748_s21] sm:$0xff]  }
 0x3d7   : > { %v2429_v53 = vpop.eup %2428 }
 0x3d8   : > { %v1070_v54 = vmul.f32 %v2429_v53, %v2902_v7 }
 0x3da   : > { %1085 = vst.msk [vmem:[%s2765_s20] sm:$0xff] %vm587_vm3, %v1070_v54  ;;  %v1093_v55 = vpack.c.bf16 %v1070_v54, %v1070_v54 }
 0x3dc   : > { %2215 = vmatmul.mubr.msk.bf16.vlgmr.msra.gmra.mrb[16].mxu1 %vm587_vm3, %v1093_v55 }
 0x3dd   : > { %2225 = vmatpush3.bf16.msra.mxu1 %v1204_v56  ;;  %2226 = vmatprep.mubr.msk.bf16.mxu1 %vm2575_vm1, %v2574_v3  ;;  %v2405_v56 = vld [vmem:[%s2748_s21 + $0x8] sm:$0xff]  }
 0x3de   : > { %1438 = vrot.lane.b32.xlu1 %v2830_v37, %s2580_s18  ;;  %2236 = vmatprep.subr.bf16.mxu1 %v2574_v3  ;;  %v1252_v37 = vsel %vm1106_vm4, %v1247_v42, 0 }
 0x3e7   : > { %1390 = vrot.lane.b32.xlu0 %v2818_v31, %s2580_s18 }
 0x41d   : > { %v1050_v57 = vpop.xlane.xlu0 %1049 }
 0x41e   : > { %2430 = vrcp.f32 %v1050_v57 }
 0x421   : > { %v1053_v58 = vpop.xlane.xlu1 %1052 }
 0x422   : > { %2432 = vrcp.f32 %v1053_v58 }
 0x425   : > { %v1056_v59 = vpop.xlane.xlu0 %1055  ;;  %v1343_v10 = vpop.permute.xlu1 %1342 }
 0x426   : > { %2434 = vrcp.f32 %v1056_v59  ;;  %v1348_v13 = vsel %vm1106_vm4, %v1343_v10, 0 }
 0x428   : > { %v2431_v60 = vpop.eup %2430 }
 0x429   : > { %v1072_v61 = vmul.f32 %v2431_v60, %v2906_v8  ;;  %v1295_v31 = vpop.permute.xlu0 %1294 }
 0x42a   : > { %v1300_v7 = vsel %vm1106_vm4, %v1295_v31, 0 }
 0x42b   : > { %1086 = vst.msk [vmem:[%s2765_s20 + $0x8] sm:$0xff] %vm587_vm3, %v1072_v61  ;;  %v1094_v62 = vpack.c.bf16 %v1072_v61, %v1072_v61 }
 0x42c   : > { %v2433_v63 = vpop.eup %2432 }
 0x42d   : > { %v1074_v0 = vmul.f32 %v2433_v63, %v2910_v20  ;;  %2221 = vmatmul.mubr.msk.bf16.vlgmr.msra.gmra.mrb[20].mxu0 %vm587_vm3, %v1094_v62 }
 0x42e   : > { %2231 = vmatpush3.bf16.msra.mxu0 %v1252_v37  ;;  %2232 = vmatprep.mubr.msk.bf16.mxu0 %vm2575_vm1, %v2574_v3 }
 0x42f   : > { %1087 = vst.msk [vmem:[%s2765_s20 + $0x10] sm:$0xff] %vm587_vm3, %v1074_v0  ;;  %v1095_v1 = vpack.c.bf16 %v1074_v0, %v1074_v0  ;;  %2242 = vmatprep.subr.bf16.mxu0 %v2574_v3 }
 0x430   : > { %v2435_v2 = vpop.eup %2434 }
 0x431   : > { %v1076_v4 = vmul.f32 %v2435_v2, %v2914_v22  ;;  %2227 = vmatmul.mubr.msk.bf16.vlgmr.msra.gmra.mrb[20].mxu1 %vm587_vm3, %v1095_v1 }
 0x432   : > { %2237 = vmatpush3.bf16.msra.mxu1 %v1300_v7  ;;  %2238 = vmatprep.mubr.msk.bf16.mxu1 %vm2575_vm1, %v2574_v3 }
 0x433   : > { %1088 = vst.msk [vmem:[%s2765_s20 + $0x18] sm:$0xff] %vm587_vm3, %v1076_v4  ;;  %v1096_v12 = vpack.c.bf16 %v1076_v4, %v1076_v4  ;;  %2248 = vmatprep.subr.bf16.mxu1 %v2574_v3 }
 0x435   : > { %2233 = vmatmul.mubr.msk.bf16.vlgmr.msra.gmra.mrb[24].mxu0 %vm587_vm3, %v1096_v12 }
 0x436   : > { %2243 = vmatpush3.bf16.msra.mxu0 %v1348_v13  ;;  %2244 = vmatprep.mubr.msk.bf16.mxu0 %vm2575_vm1, %v2574_v3 }
 0x437   : > { %2254 = vmatprep.subr.bf16.mxu0 %v2574_v3 }
 0x456   : > { %v1059_v14 = vpop.xlane.xlu1 %1058 }
 0x457   : > { %2436 = vrcp.f32 %v1059_v14 }
 0x45a   : > { %v1065_v26 = vpop.xlane.xlu1 %1064  ;;  %v1062_v15 = vpop.xlane.xlu0 %1061 }
 0x45b   : > { %2438 = vrcp.f32 %v1065_v26 }
 0x45c   : > { %2440 = vrcp.f32 %v1062_v15 }
 0x45e   : > { %v1068_v23 = vpop.xlane.xlu0 %1067  ;;  %v1439_v25 = vpop.permute.xlu1 %1438 }
 0x45f   : > { %2442 = vrcp.f32 %v1068_v23  ;;  %v1444_v32 = vsel %vm1106_vm4, %v1439_v25, 0 }
 0x461   : > { %v2437_v17 = vpop.eup %2436 }
 0x462   : > { %v1078_v24 = vmul.f32 %v2437_v17, %v2926_v29  ;;  %v1391_v18 = vpop.permute.xlu0 %1390 }
 0x463   : > { %v1396_v16 = vsel %vm1106_vm4, %v1391_v18, 0 }
 0x464   : > { %1089 = vst.msk [vmem:[%s2765_s20 + $0x20] sm:$0xff] %vm587_vm3, %v1078_v24  ;;  %v1097_v8 = vpack.c.bf16 %v1078_v24, %v1078_v24 }
 0x465   : > { %v2439_v19 = vpop.eup %2438 }
 0x466   : > { %v2441_v20 = vpop.eup %2440  ;;  %v1082_v21 = vmul.f32 %v2439_v19, %v2932_v47  ;;  %2239 = vmatmul.mubr.msk.bf16.vlgmr.msra.gmra.mrb[24].mxu1 %vm587_vm3, %v1097_v8 }
 0x467   : > { %v1080_v22 = vmul.f32 %v2441_v20, %v2928_v33  ;;  %2249 = vmatpush3.bf16.msra.mxu1 %v1396_v16  ;;  %2250 = vmatprep.mubr.msk.bf16.mxu1 %vm2575_vm1, %v2574_v3 }
 0x468   : > { %1091 = vst.msk [vmem:[%s2765_s20 + $0x30] sm:$0xff] %vm587_vm3, %v1082_v21  ;;  %2260 = vmatprep.subr.bf16.mxu1 %v2574_v3  ;;  %v1099_v34 = vpack.c.bf16 %v1082_v21, %v1082_v21 }
 0x469   : > { %v2443_v27 = vpop.eup %2442  ;;  %1090 = vst.msk [vmem:[%s2765_s20 + $0x28] sm:$0xff] %vm587_vm3, %v1080_v22  ;;  %v1098_v28 = vpack.c.bf16 %v1080_v22, %v1080_v22 }
 0x46a   : > { %v1084_v30 = vmul.f32 %v2443_v27, %v2938_v51  ;;  %v1525_v27 = vsub.s32 1, %v2785_v9 }
 0x46b   : > { %2245 = vmatmul.mubr.msk.bf16.vlgmr.msra.gmra.mrb[28].mxu0 %vm587_vm3, %v1098_v28 }
 0x46c   : > { %1092 = vst.msk [vmem:[%s2765_s20 + $0x38] sm:$0xff] %vm587_vm3, %v1084_v30  ;;  %2255 = vmatpush3.bf16.msra.mxu0 %v1444_v32  ;;  %2256 = vmatprep.mubr.msk.bf16.mxu0 %vm2575_vm1, %v2574_v3  ;;  %v1100_v35 = vpack.c.bf16 %v1084_v30, %v1084_v30  ;;  %v1526_v28 = vrot.slane %v2789_v11, %v1525_v27 }
 0x46d   : > { %2268 = vmatprep.subr.bf16.mxu0 %v2574_v3 }
 0x46e   : > { %2251 = vmatmul.mubr.msk.bf16.vlgmr.msra.gmra.mrb[28].mxu1 %vm587_vm3, %v1099_v34 }
 0x46f   : > { %2264 = vmatprep.mubr.msk.bf16.mxu1 %vm2575_vm1, %v2574_v3  ;;  %2261 = vmatpush3.bf16.msra.mxu1 %v2404_v52 }
 0x470   : > { %2262 = vmatprep.subr.bf16.mxu1 %v2574_v3 }
 0x473   : > { %2257 = vmatmul.mubr.msk.bf16.vlgmr.msra.gmra.mrb[32].mxu0 %vm587_vm3, %v1100_v35  ;;  %2263 = vmatpush3.bf16.msra.mxu1 %v2405_v56 }
 0x474   : > { %2272 = vmatprep.mubr.msk.bf16.mxu0 %vm2575_vm1, %v2574_v3  ;;  %2276 = vmatprep.subr.bf16.mxu1 %v2574_v3 }
 0x4af   : > { %v1144_v36 = vpop.f32.mrb[16].mxu1 }
 0x4b0   : > { %v2216_v38 = vpop.f32.mrb[17].mxu1 }
 0x4b1   : > { %v1147_v39 = vpop.f32.mrb[18].mxu1 }
 0x4b2   : > { %v2217_v40 = vpop.f32.mrb[19].mxu1 }
 0x500   : > { %v1192_v41 = vpop.f32.mrb[20].mxu0 }
 0x501   : > { %v2222_v43 = vpop.f32.mrb[21].mxu0 }
 0x502   : > { %v1195_v44 = vpop.f32.mrb[22].mxu0 }
 0x503   : > { %v2223_v45 = vpop.f32.mrb[23].mxu0 }
 0x504   : > { %v1240_v29 = vpop.f32.mrb[20].mxu1 }
 0x505   : > { %v2228_v33 = vpop.f32.mrb[21].mxu1 }
 0x506   : > { %v1243_v42 = vpop.f32.mrb[22].mxu1 }
 0x507   : > { %v2229_v46 = vpop.f32.mrb[23].mxu1 }
 0x508   : > { %v1288_v47 = vpop.f32.mrb[24].mxu0 }
 0x509   : > { %v2234_v48 = vpop.f32.mrb[25].mxu0 }
 0x50a   : > { %v1291_v49 = vpop.f32.mrb[26].mxu0 }
 0x50b   : > { %v2235_v50 = vpop.f32.mrb[27].mxu0 }
 0x50c   : > { %v2407_v50 = vld [vmem:[%s2753_s9 + $0x8] sm:$0xff]  }
 0x539   : > { %v1336_v51 = vpop.f32.mrb[24].mxu1 }
 0x53a   : > { %v2240_v53 = vpop.f32.mrb[25].mxu1 }
 0x53b   : > { %v1339_v54 = vpop.f32.mrb[26].mxu1 }
 0x53c   : > { %v2241_v55 = vpop.f32.mrb[27].mxu1 }
 0x53e   : > { %v1384_v57 = vpop.f32.mrb[28].mxu0 }
 0x53f   : > { %v2387_v58 = vpack.i.bf16 %v1384_v57, %v1192_v41  ;;  %v2246_v59 = vpop.f32.mrb[29].mxu0  ;;  %v1614_v57 = vsub.s32 2, %v2785_v9 }
 0x540   : > { %v1387_v60 = vpop.f32.mrb[30].mxu0  ;;  %v1620_v59 = vsub.s32 3, %v2785_v9 }
 0x541   : > { %2388 = vrot.lane.b32.xlu0 %v2387_v58, %s2581_s23  ;;  %v2247_v61 = vpop.f32.mrb[31].mxu0  ;;  %v1432_v62 = vpop.f32.mrb[28].mxu1  ;;  %v1615_v58 = vrot.slane %v2789_v11, %v1614_v57 }
 0x542   : > { %v2392_v63 = vpack.i.bf16 %v1432_v62, %v1240_v29  ;;  %v2252_v37 = vpop.f32.mrb[29].mxu1 }
 0x543   : > { %v1435_v0 = vpop.f32.mrb[30].mxu1 }
 0x544   : > { %2393 = vrot.lane.b32.xlu1 %v2392_v63, %s2582_s25  ;;  %v2253_v31 = vpop.f32.mrb[31].mxu1  ;;  %v1621_v0 = vrot.slane %v2789_v11, %v1620_v59  ;;  %v1817_v59 = vsub.s32 7, %v2785_v9 }
 0x546   : > { %v1480_v1 = vpop.f32.mrb[32].mxu0 }
 0x547   : > { %v2397_v2 = vpack.i.bf16 %v1480_v1, %v1288_v47  ;;  %v2258_v4 = vpop.f32.mrb[33].mxu0 }
 0x548   : > { %v1483_v7 = vpop.f32.mrb[34].mxu0 }
 0x549   : > { %2398 = vrot.lane.b32.xlu0 %v2397_v2, %s2583_s26  ;;  %v2259_v10 = vpop.f32.mrb[35].mxu0  ;;  %v2408_v7 = vld [vmem:[%s2758_s13] sm:$0xff]  }
 0x54a   : > { %v2409_v10 = vld [vmem:[%s2758_s13 + $0x8] sm:$0xff]  }
 0x5b3   : > { %v2389_v12 = vpop.permute.xlu0 %2388 }
 0x5b4   : > { %v2391_v14 = vunpack.i.h.bf16 %v2389_v12  ;;  %v2390_v26 = vunpack.i.l.bf16 %v2389_v12  ;;  %v2410_v12 = vld [vmem:[%s2758_s13 + $0x10] sm:$0xff]  }
 0x5b6   : > { %v2394_v13 = vpop.permute.xlu1 %2393  ;;  %v1511_v24 = vsel %vm587_vm3, %v1336_v51, %v2391_v14  ;;  %v1510_v18 = vsel %vm587_vm3, %v1144_v36, %v2390_v26  ;;  %v1631_v14 = vsub.s32 4, %v2785_v9 }
 0x5b7   : > { %v2396_v15 = vunpack.i.h.bf16 %v2394_v13  ;;  %v2395_v23 = vunpack.i.l.bf16 %v2394_v13  ;;  %v2411_v13 = vld [vmem:[%s2758_s13 + $0x18] sm:$0xff]  }
 0x5b8   : > { %v1632_v26 = vrot.slane %v2789_v11, %v1631_v14 }
 0x5b9   : > { %v1513_v20 = vsel %vm1512_vm5, %v1510_v18, %v2395_v23  ;;  %v1514_v21 = vsel %vm1512_vm5, %v1511_v24, %v2396_v15 }
 0x5bb   : > { %v2399_v17 = vpop.permute.xlu0 %2398 }
 0x5bc   : > { %v2401_v8 = vunpack.i.h.bf16 %v2399_v17  ;;  %v2400_v19 = vunpack.i.l.bf16 %v2399_v17 }
 0x5be   : > { %v1517_v16 = vsel %vm1515_vm6, %v1514_v21, %v2401_v8  ;;  %v1516_v22 = vsel %vm1515_vm6, %v1513_v20, %v2400_v19 }
 0x5bf   : > { %v1518_v25 = vpack.c.bf16 %v1517_v16, %v1516_v22 }
 0x5c1   : > { %2265 = vmatmul.mubr.msk.bf16.vlgmr.msra.gmra.mrb[32].mxu1 %vm481_vm2, %v1518_v25 }
 0x5c2   : > { %2284 = vmatprep.mubr.msk.bf16.mxu1 %vm2575_vm1, %v2574_v3  ;;  %2277 = vmatpush3.bf16.msra.mxu1 %v2408_v7 }
 0x5c3   : > { %2278 = vmatprep.subr.bf16.mxu1 %v2574_v3 }
 0x5c6   : > { %2279 = vmatpush3.bf16.msra.mxu1 %v2409_v10 }
 0x5c7   : > { %2280 = vmatprep.subr.bf16.mxu1 %v2574_v3 }
 0x5ca   : > { %2281 = vmatpush3.bf16.msra.mxu1 %v2410_v12 }
 0x5cb   : > { %2282 = vmatprep.subr.bf16.mxu1 %v2574_v3 }
 0x5ce   : > { %2283 = vmatpush3.bf16.msra.mxu1 %v2411_v13 }
 0x694   : > { %v1576_v30 = vpop.f32.mrb[32].mxu1 }
 0x695   : > { %v1577_v32 = vadd.f32 %v1576_v30, %v1526_v28  ;;  %v2266_v34 = vpop.f32.mrb[33].mxu1 }
 0x696   : > { %v1579_v35 = vpop.f32.mrb[34].mxu1  ;;  %v1710_v34 = vsub.s32 5, %v2785_v9 }
 0x697   : > { %v1580_v36 = vadd.f32 %v1579_v35, %v1526_v28  ;;  %v2267_v38 = vpop.f32.mrb[35].mxu1  ;;  %v1583_v39 = vadd.f32 %v1577_v32, %v2772_v5 }
 0x698   : > { %v1711_v35 = vrot.slane %v2789_v11, %v1710_v34 }
 0x699   : > { %v1585_v40 = vsel %vm481_vm2, %v1583_v39, 0.0  ;;  %v1584_v41 = vadd.f32 %v1580_v36, %v2774_v6  ;;  %v2406_v6 = vld [vmem:[%s2753_s9] sm:$0xff]   ;;  %s2584_s9 = smov [#allocation5]  }
 0x69a   : > { %1586 = vadd.xlane.f32.xlu1 %v1585_v40  ;;  %2269 = vmatpush3.bf16.msra.mxu0 %v2406_v6  ;;  %s1837_s13 = sshll.u32 %s2584_s9, 4  ;;  %s1838_s13 = int_to_ptr.vmem [resolvable:$true] %s1837_s13 }
 0x69b   : > { %v1588_v43 = vsel %vm481_vm2, %v1584_v41, 0.0  ;;  %2270 = vmatprep.subr.bf16.mxu0 %v2574_v3  ;;  %s2485_s11 = scalar_lea.vmem %s1838_s13, 256  ;;  %p2492_p1 = scmp.lt.s32.totalorder %s1838_s13, %s1838_s13 }
 0x69c   : > { %1589 = vadd.xlane.f32.xlu0 %v1588_v43  ;;  %p2486_p8 = scmp.ne.s32.totalorder %s1838_s13, %s2485_s11  ;;  %p2493_p5 = scmp.lt.s32.totalorder %s2485_s11, %s2485_s11 }
 0x69e   : > { %2271 = vmatpush3.bf16.msra.mxu0 %v2407_v50  ;;  %p2487_p11 = pnand %p2486_p8, %p3158_p10  ;;  %p2494_p6 = por %p2493_p5, %p2492_p1 }
 0x6a0   : > { %p2488_p13 = pneg %p2487_p11 }
 0x6a2   : > { %p2495_p7 = pnand %p2494_p6, %p2488_p13 }
 0x727   : > { %v1587_v44 = vpop.xlane.xlu1 %1586 }
 0x728   : > { %v1592_v45 = vmul.f32 0.03125, %v1587_v44 }
 0x729   : > { %v1590_v29 = vpop.xlane.xlu0 %1589 }
 0x72a   : > { %v1594_v33 = vsub.f32 %v1583_v39, %v1592_v45  ;;  %v1593_v42 = vmul.f32 0.03125, %v1590_v29 }
 0x72c   : > { %v1595_v46 = vsub.f32 %v1584_v41, %v1593_v42  ;;  %v1596_v47 = vmul.f32 %v1594_v33, %v1594_v33 }
 0x72e   : > { %v1598_v48 = vsel %vm481_vm2, %v1596_v47, 0.0  ;;  %v1597_v5 = vmul.f32 %v1595_v46, %v1595_v46 }
 0x72f   : > { %1599 = vadd.xlane.f32.xlu0 %v1598_v48 }
 0x730   : > { %v1601_v49 = vsel %vm481_vm2, %v1597_v5, 0.0 }
 0x731   : > { %1602 = vadd.xlane.f32.xlu1 %v1601_v49 }
 0x7bc   : > { %v1600_v51 = vpop.xlane.xlu0 %1599 }
 0x7bd   : > { %v1604_v52 = vmul.f32 0.03125, %v1600_v51 }
 0x7be   : > { %v1603_v53 = vpop.xlane.xlu1 %1602 }
 0x7bf   : > { %v1606_v54 = vadd.f32 1e-12, %v1604_v52  ;;  %v1605_v55 = vmul.f32 0.03125, %v1603_v53 }
 0x7c1   : > { %2444 = vrsqrt.f32 %v1606_v54  ;;  %v1607_v56 = vadd.f32 1e-12, %v1605_v55 }
 0x7c3   : > { %2446 = vrsqrt.f32 %v1607_v56 }
 0x7cb   : > { %v2445_v60 = vpop.eup %2444 }
 0x7cc   : > { %v1610_v61 = vmul.f32 %v2445_v60, %v1594_v33  ;;  %v2456_v60 = vld [vmem:[%s2763_s22] sm:$0xff] }
 0x7cd   : > { %v2447_v62 = vpop.eup %2446 }
 0x7ce   : > { %v1616_v63 = vmul.f32 %v1615_v58, %v1610_v61  ;;  %v1611_v37 = vmul.f32 %v2447_v62, %v1595_v46 }
 0x7d0   : > { %v1617_v31 = vmul.f32 %v1615_v58, %v1611_v37  ;;  %v1622_v1 = vadd.f32 %v1621_v0, %v1616_v63  ;;  %v1811_v58 = vsub.s32 6, %v2785_v9  ;;  %v1818_v37 = vrot.slane %v2456_v60, %v1817_v59 }
 0x7d2   : > { %v1623_v2 = vadd.f32 %v1621_v0, %v1617_v31  ;;  %v1812_v61 = vrot.slane %v2456_v60, %v1811_v58 }
 0x7d4   : > { %v1624_v4 = vpack.c.bf16 %v1623_v2, %v1622_v1 }
 0x7d6   : > { %2273 = vmatmul.mubr.msk.bf16.vlgmr.msra.gmra.mrb[36].mxu0 %vm481_vm2, %v1624_v4 }
 0x8a9   : > { %v1682_v15 = vpop.f32.mrb[36].mxu0 }
 0x8aa   : > { %v1683_v23 = vadd.f32 %v1682_v15, %v1632_v26  ;;  %v2274_v17 = vpop.f32.mrb[37].mxu0 }
 0x8ab   : > { %v1685_v24 = vpop.f32.mrb[38].mxu0 }
 0x8ac   : > { %v1691_v18 = vmul.f32 0.70710677, %v1683_v23  ;;  %v1686_v8 = vadd.f32 %v1685_v24, %v1632_v26  ;;  %v2275_v19 = vpop.f32.mrb[39].mxu0  ;;  %v1689_v3 = vmul.f32 0.5, %v1683_v23 }
 0x8ae   : > { %2448 = verf.f32 %v1691_v18  ;;  %v1692_v20 = vmul.f32 0.70710677, %v1686_v8  ;;  %v1690_v25 = vmul.f32 0.5, %v1686_v8 }
 0x8b0   : > { %2450 = verf.f32 %v1692_v20 }
 0x8b8   : > { %v2449_v21 = vpop.eup %2448 }
 0x8b9   : > { %v1695_v16 = vadd.f32 1.0, %v2449_v21 }
 0x8ba   : > { %v2451_v22 = vpop.eup %2450 }
 0x8bb   : > { %v1696_v27 = vadd.f32 1.0, %v2451_v22  ;;  %v1697_v28 = vmul.f32 %v1695_v16, %v1689_v3 }
 0x8bd   : > { %v1698_v30 = vmul.f32 %v1696_v27, %v1690_v25 }
 0x8bf   : > { %v1699_v32 = vpack.c.bf16 %v1698_v30, %v1697_v28 }
 0x8c1   : > { %2285 = vmatmul.mubr.msk.bf16.vlgmr.msra.gmra.mrb[36].mxu1 %vm1736_vm7, %v1699_v32 }
 0x994   : > { %v1774_v36 = vpop.f32.mrb[36].mxu1 }
 0x995   : > { %v1775_v38 = vadd.f32 %v1774_v36, %v1711_v35  ;;  %v2286_v39 = vpop.f32.mrb[37].mxu1 }
 0x996   : > { %v1777_v40 = vpop.f32.mrb[38].mxu1 }
 0x997   : > { %v1778_v41 = vadd.f32 %v1777_v40, %v1711_v35  ;;  %v2287_v43 = vpop.f32.mrb[39].mxu1  ;;  %v1781_v44 = vadd.f32 %v1775_v38, %v1622_v1 }
 0x999   : > { %v1783_v45 = vsel %vm481_vm2, %v1781_v44, 0.0  ;;  %v1782_v29 = vadd.f32 %v1778_v41, %v1623_v2 }
 0x99a   : > { %1784 = vadd.xlane.f32.xlu0 %v1783_v45 }
 0x99b   : > { %v1786_v33 = vsel %vm481_vm2, %v1782_v29, 0.0 }
 0x99c   : > { %1787 = vadd.xlane.f32.xlu1 %v1786_v33 }
 0xa27   : > { %v1785_v42 = vpop.xlane.xlu0 %1784 }
 0xa28   : > { %v1789_v46 = vmul.f32 0.03125, %v1785_v42 }
 0xa29   : > { %v1788_v47 = vpop.xlane.xlu1 %1787 }
 0xa2a   : > { %v1791_v48 = vsub.f32 %v1781_v44, %v1789_v46  ;;  %v1790_v5 = vmul.f32 0.03125, %v1788_v47 }
 0xa2c   : > { %v1792_v11 = vsub.f32 %v1782_v29, %v1790_v5  ;;  %v1793_v49 = vmul.f32 %v1791_v48, %v1791_v48 }
 0xa2e   : > { %v1795_v6 = vsel %vm481_vm2, %v1793_v49, 0.0  ;;  %v1794_v50 = vmul.f32 %v1792_v11, %v1792_v11 }
 0xa2f   : > { %1796 = vadd.xlane.f32.xlu0 %v1795_v6 }
 0xa30   : > { %v1798_v51 = vsel %vm481_vm2, %v1794_v50, 0.0 }
 0xa31   : > { %1799 = vadd.xlane.f32.xlu1 %v1798_v51 }
 0xabc   : > { %v1797_v52 = vpop.xlane.xlu0 %1796 }
 0xabd   : > { %v1801_v53 = vmul.f32 0.03125, %v1797_v52 }
 0xabe   : > { %v1800_v54 = vpop.xlane.xlu1 %1799 }
 0xabf   : > { %v1803_v55 = vadd.f32 1e-12, %v1801_v53  ;;  %v1802_v56 = vmul.f32 0.03125, %v1800_v54 }
 0xac1   : > { %2452 = vrsqrt.f32 %v1803_v55  ;;  %v1804_v57 = vadd.f32 1e-12, %v1802_v56 }
 0xac3   : > { %2454 = vrsqrt.f32 %v1804_v57 }
 0xacb   : > { %v2453_v62 = vpop.eup %2452 }
 0xacc   : > { %v1807_v63 = vmul.f32 %v2453_v62, %v1791_v48 }
 0xacd   : > { %v2455_v0 = vpop.eup %2454 }
 0xace   : > { %v1808_v31 = vmul.f32 %v2455_v0, %v1792_v11  ;;  %v1813_v1 = vmul.f32 %v1812_v61, %v1807_v63 }
 0xad0   : > { %v1814_v2 = vmul.f32 %v1812_v61, %v1808_v31  ;;  %v1819_v4 = vadd.f32 %v1818_v37, %v1813_v1 }
 0xad2   : > { %v1820_v7 = vadd.f32 %v1818_v37, %v1814_v2  ;;  %1821 = vst.msk [vmem:[#allocation5] sm:$0xff] %vm481_vm2, %v1819_v4 }
 0xad4   : > { %1822 = vst.msk [vmem:[#allocation5 + $0x8] sm:$0xff] %vm481_vm2, %v1820_v7 }
 0xad5   : > { %2498 = shalt.err (!%p2495_p7)
}
 0xad6   : > { %s2499_s22 = scalar_lea.hbm %s3125_s7, 256 }
 0xad7   : > { %p2500_p9 = scmp.ne.s32.totalorder %s3125_s7, %s2499_s22  ;;  %p2505_p3 = scmp.lt.u32.totalorder %s2499_s22, %s3125_s7 }
 0xad9   : > { %p2501_p12 = pnand %p2500_p9, %p3158_p10 }
 0xadb   : > { %p2502_p0 = pneg %p2501_p12 }
 0xadd   : > { %p2507_p2 = pnand %p2505_p3, %p2502_p0 }
 0xadf   : > { %2510 = shalt.err (!%p2507_p2)
}
 0xae0   : > { %s2585_s18 = smov 128   ;;  %s3159_s12 = sand.u32 1, %s2553_s28  }
 0xae1   : > { %2293 = dma.vmem_to_hbm [thread:$0]  (%p3158_p10), %s1838_s13, 256, %s3125_s7, [#allocation4], %s2585_s18, %s2585_s18, %s2581_s23  }
 0xae2   : > { %s1824_s17 = scalar_lea.sflag [#allocation7], %s3159_s12 }
 0xae3   : > { %s2109_s25 = sshll.u32 %s2561_s30, 9  ;;  %s1872_s26 = sshll.u32 %s2765_s20, 4  ;;  %s1873_s26 = int_to_ptr.vmem [resolvable:$true] %s1872_s26 }
 0xae4   : > { %s1855_s21 = scalar_lea.hbm %s3126_s8, %s2109_s25  ;;  %s2586_s14 = smov 512  }
 0xae5   : > { %p3160_p4 = scmp.ne.s32.totalorder %s3148_s16, 0  ;;  %s2587_s23 = smov 1024  }
 0xae6   : > { %s2588_s13 = smov 4   ;;  %s2589_s22 = smov 128  }
 0xae7   : > { %2294 = sst [smem:[#allocation9]] (%p3160_p4), %s2586_s14  ;;  %s2590_s30 = smov 8  }
 0xae8   : > { %2295 = sst [smem:[#allocation9 + $0x1]] (%p3160_p4), %s2587_s23  ;;  %s2591_s20 = smov [#allocation8]  }
 0xae9   : > { %2296 = sst [smem:[#allocation9 + $0x2]] (%p3160_p4), %s2588_s13  ;;  %s2592_s0 = smov 0  }
 0xaea   : > { %2297 = sst [smem:[#allocation9 + $0x3]] (%p3160_p4), %s2589_s22 }
 0xaeb   : > { %2298 = sst [smem:[#allocation9 + $0x4]] (%p3160_p4), %s2589_s22 }
 0xaec   : > { %2299 = sst [smem:[#allocation9 + $0x5]] (%p3160_p4), %s2590_s30 }
 0xaed   : > { %2300 = dma.general (%p3160_p4), %s1873_s26, 1024, %s1855_s21, %s1824_s17, %s2591_s20, [#allocation9], %s2592_s0, 0  }
 0xaee   : > { %2540 = dma.done.wait (%p3158_p10), [#allocation4], 256  }
 0xaef   : > { %2542 = vsyncadd (%p3158_p10), [#allocation4], 4294967040 }
 0xaf0 PF: > { %s3161_s27 = sld [smem:[#allocation16_spill]]  ;;  %s3162_s29 = sld [smem:[#allocation13_spill]] }
 0xaf1   : > { %s3163_s10 = sld [smem:[#allocation18_spill]] }
 0xaf6   : > { %p2316_p8 = scmp.ge.s32.totalorder %s3161_s27, 2  ;;  %s1904_s18 = sand.u32 1, %s3162_s29  }
 0xaf7   : > { %p3164_p11 = scmp.ne.s32.totalorder %s3163_s10, 0  ;;  %s1905_s19 = scalar_lea.sflag [#allocation7], %s1904_s18 }
 0xaf9   : > { %p2309_p13 = pnand %p2316_p8, %p3164_p11 }
 0xafb   : > { %2544 = dma.done.wait (!%p2309_p13), %s1905_s19, 1024  }
 0xafc   : > { %2546 = vsyncadd (!%p2309_p13), %s1905_s19, 4294966272  ;;  %s24_s10 = sadd.s32 1, %s3161_s27   ;;  %s3165_s16 = sld [smem:[#allocation14_spill]] }
 0xafd   : > { %p21_p1 = scmp.ge.s32.totalorder %s24_s10, 4   ;;  %s3166_s29 = sld [smem:[#allocation19_spill]] }
 0xafe   : > { %s3167_s30 = sld [smem:[#allocation15_spill]]  ;;  %s3168_s9 = sld [smem:[#allocation17_spill]] }
 0xaff   : > { %s3169_s27 = smov %s2553_s28  ;;  %23 = sbr.rel (!%p21_p1) target bundleno = 8 (0x8), region = 123 }
 0xb02   : > { %s3170_s28 = smov %s3165_s16 }
 0xb06   :  { %1910 = vsyncpa [#allocation3], 1 }
 0xb07   :  { %1912 = vsyncpa [#allocation3 + $0x1], 1 }
 0xb08   :  { %1913 = vsyncpa [#allocation4], 1 }
 0xb09   :  { %1915 = vsyncpa [#allocation4 + $0x1], 1 }
 0xb0a   :  { %1916 = vsyncpa [#allocation7], 1 }
 0xb0b   :  { %1918 = vsyncpa [#allocation7 + $0x1], 1 }

</bundles_post_ra>
